<compile_context>
chip_gen: v7x
topology: tpu7x:2x2x1
jax: 0.10.0
libtpu: 0.0.40
codegen_flags: <defaults>
</compile_context>

<pallas_src>
import functools
import math

import jax
import jax.numpy as jnp
from jax import lax
from jax.experimental import pallas as pl
from jax.experimental.pallas import tpu as pltpu


def _round_up(x, m):
    return (x + m - 1) // m * m


def _cdiv(a, b):
    return (a + b - 1) // b


def _vmem_capacity_bytes():
    """Physical VMEM per TensorCore for the local device (conservative fallback)."""
    try:
        dev = jax.devices()[0]
        if dev.platform == "tpu":
            kind = str(getattr(dev, "device_kind", "")).lower()
            if "v7" in kind:
                return 64 * 1024 * 1024
            return 128 * 1024 * 1024        # v4 / v5e / v6e
    except Exception:
        pass
    return 64 * 1024 * 1024                 # interpret / unknown: be conservative


def _pick_tiling(K, max_batch, H1, H2, D, vmem_cap):
    """Largest K tile (multiple of 256) whose double-buffered (image, w1) tiles
    plus resident weights/accumulator/epilogue fit a VMEM budget, then shrunk
    to minimize zero padding of K."""
    K256 = _round_up(K, 256)
    B = max_batch
    epilogue = (2 * B * (H1 + H2 + D) + 2 * D * D + 8 * D) * 4       # f32 temporaries
    resident = ((H1 * H2 + H2 * D) * 2 + (H1 + H2 + D) * 4
                + 2 * B * H1 * 4 + epilogue)
    budget = int(vmem_cap) * 3 // 8                                   # leave headroom
    per_k = 2 * (B * 2 + H1 * 2)            # double-buffered bf16 image col + w1 row
    tk = max(256, ((budget - resident) // per_k) // 256 * 256)
    tk = min(tk, K256)
    nk = _cdiv(K256, tk)
    tk = _round_up(_cdiv(K, nk), 256)        # shrink tile -> less zero padding
    K_pad = nk * tk
    return tk, K_pad, nk


def _lsr(v, s):
    """Logical right shift on int32 using only portable jnp ops."""
    return jnp.bitwise_and(v >> s, jnp.int32((1 << (32 - s)) - 1))


def _mix32(v):
    """Murmur3-style 32-bit finalizer (int32, wrap-around multiplies)."""
    v = jnp.bitwise_xor(v, _lsr(v, 16))
    v = v * jnp.int32(-2048144789)           # 0x85EBCA6B
    v = jnp.bitwise_xor(v, _lsr(v, 13))
    v = v * jnp.int32(-1028477387)           # 0xC2B2AE35
    v = jnp.bitwise_xor(v, _lsr(v, 16))
    return v


# ---------------------------------------------------------------------------
# Fused kernel: augment (2 views) + backbone + projector + VICReg loss
# ---------------------------------------------------------------------------
def _fused_vicreg_kernel(
    seed_ref,   # (1,)       int32 SMEM (scalar prefetch)
    x_ref,      # (B, tk)    bf16  flattened image, one K-tile
    w1_ref,     # (tk, H1)   bf16  backbone weight, one K-tile
    b1_ref,     # (1, H1)    f32
    w2_ref,     # (H1, H2)   bf16  (resident)
    b2_ref,     # (1, H2)    f32
    w3_ref,     # (H2, D)    bf16  (resident)
    b3_ref,     # (1, D)     f32
    out_ref,    # (4,)       f32 SMEM: [total, sim, std, cov]
    acc_ref,    # (2B, H1)   f32 VMEM scratch: layer-1 accumulator, both views
    *,
    batch_size,
    feature_size,
    k_padded,
    tile_k,
    sim_coef,
    std_coef,
    cov_coef,
    noise_scale,
):
    k = pl.program_id(0)
    nk = pl.num_programs(0)
    B = batch_size
    D = feature_size
    tk = tile_k

    @pl.when(k == 0)
    def _init():
        acc_ref[...] = jnp.zeros_like(acc_ref)

    # ---- in-kernel augmentation: two additive-uniform-noise views -----------
    # TODO(synk): stand-in for the injected stochastic `augment_fn`.
    seed = seed_ref[0]
    row = lax.broadcasted_iota(jnp.int32, (B, tk), 0)
    col = lax.broadcasted_iota(jnp.int32, (B, tk), 1) + k * jnp.int32(tk)
    base = row * jnp.int32(k_padded) + col                   # global element index

    def _uniform_pm(h):
        # low 23 hash bits -> uniform noise in [-noise_scale, noise_scale)
        m = jnp.bitwise_and(h, jnp.int32(0x7FFFFF)).astype(jnp.float32)
        return (m * jnp.float32(2.0 * noise_scale / float(1 << 23))
                - jnp.float32(noise_scale))

    n1 = _uniform_pm(_mix32(jnp.bitwise_xor(base, seed)))
    n2 = _uniform_pm(_mix32(jnp.bitwise_xor(base, seed + jnp.int32(0x632BE59B))))

    x32 = x_ref[...].astype(jnp.float32)                     # (B, tk)
    xa1 = (x32 + n1).astype(jnp.bfloat16)
    xa2 = (x32 + n2).astype(jnp.bfloat16)

    # ---- backbone linear: K-tiled MXU accumulation, one pass per view -------
    w1 = w1_ref[...]
    acc_ref[0:B, :] += jnp.dot(xa1, w1, preferred_element_type=jnp.float32)
    acc_ref[B:2 * B, :] += jnp.dot(xa2, w1, preferred_element_type=jnp.float32)

    # ---- finalize on the last K tile: projector MLP + VICReg loss -----------
    @pl.when(k == nk - 1)
    def _finalize():
        h1 = jnp.maximum(acc_ref[...] + b1_ref[...], 0.0)                    # (2B, H1)
        h2 = jnp.dot(h1.astype(jnp.bfloat16), w2_ref[...],
                     preferred_element_type=jnp.float32) + b2_ref[...]
        h2 = jnp.maximum(h2, 0.0)                                            # (2B, H2)
        z = jnp.dot(h2.astype(jnp.bfloat16), w3_ref[...],
                    preferred_element_type=jnp.float32) + b3_ref[...]        # (2B, D)

        zx = z[0:B, :]
        zy = z[B:2 * B, :]

        # invariance loss: MSE between the two projections
        diff = zx - zy
        repr_loss = jnp.mean(diff * diff)

        # fold unbiased 1/(B-1) into the centered activations
        inv_sqrt_denom = jnp.float32(1.0 / math.sqrt(B - 1))
        xm = (zx - jnp.mean(zx, axis=0, keepdims=True)) * inv_sqrt_denom
        ym = (zy - jnp.mean(zy, axis=0, keepdims=True)) * inv_sqrt_denom

        # variance loss (var == diag of the covariance below)
        var_x = jnp.sum(xm * xm, axis=0, keepdims=True)                      # (1, D)
        var_y = jnp.sum(ym * ym, axis=0, keepdims=True)
        std_x = jnp.sqrt(var_x + 1e-4)
        std_y = jnp.sqrt(var_y + 1e-4)
        std_loss = (jnp.mean(jnp.maximum(1.0 - std_x, 0.0)) / 2.0
                    + jnp.mean(jnp.maximum(1.0 - std_y, 0.0)) / 2.0)

        # covariance loss: off-diagonal Frobenius via sum(cov^2) - sum(diag^2)
        cov_x = lax.dot_general(xm, xm, (((0,), (0,)), ((), ())),
                                preferred_element_type=jnp.float32)          # (D, D)
        cov_y = lax.dot_general(ym, ym, (((0,), (0,)), ((), ())),
                                preferred_element_type=jnp.float32)
        cov_loss = ((jnp.sum(cov_x * cov_x) - jnp.sum(var_x * var_x))
                    + (jnp.sum(cov_y * cov_y) - jnp.sum(var_y * var_y))) / jnp.float32(D)

        loss = (jnp.float32(sim_coef) * repr_loss
                + jnp.float32(std_coef) * std_loss
                + jnp.float32(cov_coef) * cov_loss)

        out_ref[0] = loss
        out_ref[1] = repr_loss
        out_ref[2] = std_loss
        out_ref[3] = cov_loss


def _fused_forward(flat_img, seed_arr, params, *, tk, k_pad, sim_coef, std_coef,
                   cov_coef, noise_scale, vmem_limit):
    w1, b1, w2, b2, w3, b3 = params
    B = flat_img.shape[0]
    H1 = w1.shape[1]
    H2 = w2.shape[1]
    D = w3.shape[1]
    assert flat_img.shape[1] == k_pad and w1.shape[0] == k_pad and k_pad % tk == 0
    nk = k_pad // tk

    kernel = functools.partial(
        _fused_vicreg_kernel,
        batch_size=int(B),
        feature_size=int(D),
        k_padded=int(k_pad),
        tile_k=int(tk),
        sim_coef=float(sim_coef),
        std_coef=float(std_coef),
        cov_coef=float(cov_coef),
        noise_scale=float(noise_scale),
    )

    flops = (2 * (2 * B) * k_pad * H1 + 2 * (2 * B) * H1 * H2
             + 2 * (2 * B) * H2 * D + 2 * 2 * B * D * D)
    bytes_accessed = (flat_img.size * 2 + (w1.size + w2.size + w3.size) * 2
                      + (b1.size + b2.size + b3.size) * 4 + 4 * 4 + 4)
    cost = pl.CostEstimate(flops=flops, transcendentals=2 * D,
                           bytes_accessed=bytes_accessed)

    return pl.pallas_call(
        kernel,
        out_shape=jax.ShapeDtypeStruct((4,), jnp.float32),
        grid_spec=pltpu.PrefetchScalarGridSpec(
            num_scalar_prefetch=1,
            grid=(nk,),
            in_specs=[
                pl.BlockSpec((B, tk), lambda k, s: (0, k)),      # image K-tile (bf16)
                pl.BlockSpec((tk, H1), lambda k, s: (k, 0)),     # w1 K-tile
                pl.BlockSpec((1, H1), lambda k, s: (0, 0)),      # b1 (resident)
                pl.BlockSpec((H1, H2), lambda k, s: (0, 0)),     # w2 (resident)
                pl.BlockSpec((1, H2), lambda k, s: (0, 0)),      # b2 (resident)
                pl.BlockSpec((H2, D), lambda k, s: (0, 0)),      # w3 (resident)
                pl.BlockSpec((1, D), lambda k, s: (0, 0)),       # b3 (resident)
            ],
            out_specs=pl.BlockSpec(memory_space=pltpu.MemorySpace.SMEM),
            scratch_shapes=[pltpu.VMEM((2 * B, H1), jnp.float32)],
        ),
        compiler_params=pltpu.CompilerParams(
            dimension_semantics=("arbitrary",),    # K is a reduction axis
            vmem_limit_bytes=int(vmem_limit),
        ),
        cost_estimate=cost,
    )(seed_arr, flat_img, w1, b1, w2, b2, w3, b3)


# ---------------------------------------------------------------------------
# VICReg module (synthetic backbone / projector / augment_fn stand-ins)
# ---------------------------------------------------------------------------
class VICRegPallas:
    def __init__(self, in_shape, hidden_dim=128, proj_hidden=256, feat_dim=128,
                 sim_coef=25.0, std_coef=25.0, cov_coef=1.0,
                 noise_scale=0.05, seed=1234, max_batch=128):
        self.sim_coef = sim_coef
        self.std_coef = std_coef
        self.cov_coef = cov_coef
        self.noise_scale = noise_scale
        self.seed = seed

        C, H, W = in_shape
        K = C * H * W
        self.K = K

        cap = _vmem_capacity_bytes()
        self.vmem_limit = cap * 3 // 4       # 48 MiB on v7x, 96 MiB on v5e/v6e
        self.tk, self.K_pad, _ = _pick_tiling(K, max_batch, hidden_dim,
                                              proj_hidden, feat_dim, cap)

        key = jax.random.PRNGKey(0)
        k1, k2, k3 = jax.random.split(key, 3)
        scale = 0.02
        w1 = scale * jax.random.normal(k1, (K, hidden_dim), jnp.float32)
        if self.K_pad != K:                  # zero rows: no-op in the matmul
            w1 = jnp.pad(w1, ((0, self.K_pad - K), (0, 0)))
        # weights stored once in bf16 (native MXU, half the HBM weight traffic)
        self.w1 = w1.astype(jnp.bfloat16)
        self.b1 = jnp.zeros((1, hidden_dim), jnp.float32)
        self.w2 = (scale * jax.random.normal(k2, (hidden_dim, proj_hidden),
                                             jnp.float32)).astype(jnp.bfloat16)
        self.b2 = jnp.zeros((1, proj_hidden), jnp.float32)
        self.w3 = (scale * jax.random.normal(k3, (proj_hidden, feat_dim),
                                             jnp.float32)).astype(jnp.bfloat16)
        self.b3 = jnp.zeros((1, feat_dim), jnp.float32)

    def parameters(self):
        return [self.w1, self.b1, self.w2, self.b2, self.w3, self.b3]

    def forward(self, image, seed=None):
        B = image.shape[0]
        # unbiased variance/covariance divide by (B - 1); B == 1 would be NaN.
        assert B >= 2, "VICReg needs batch size >= 2"
        flat = image.reshape(B, -1).astype(jnp.bfloat16)     # bf16 image stream
        if self.K_pad != self.K:
            flat = jnp.pad(flat, ((0, 0), (0, self.K_pad - self.K)))
        seed_val = self.seed if seed is None else seed
        seed_arr = jnp.asarray([seed_val], dtype=jnp.int32)  # runtime, no recompile

        out = _fused_forward(
            flat, seed_arr,
            (self.w1, self.b1, self.w2, self.b2, self.w3, self.b3),
            tk=self.tk, k_pad=self.K_pad, sim_coef=self.sim_coef,
            std_coef=self.std_coef, cov_coef=self.cov_coef,
            noise_scale=self.noise_scale, vmem_limit=self.vmem_limit)

        loss = out[0]
        loss_info = {
            "total_loss": out[0],
            "sim_loss": out[1],
            "std_loss": out[2],
            "cov_loss": out[3],
        }
        return loss, loss_info

    # TODO(synk): .to(device)/train()/eval()/state_dict() are framework plumbing
    # with no Pallas-kernel equivalent; omitted.


# ---------------------------------------------------------------------------
if __name__ == "__main__":
    B, C, H, W = 2, 3, 16, 16        # small, consistent with the (N, 3, H, W) forward
    image = jax.random.normal(jax.random.PRNGKey(0), (B, C, H, W), jnp.float32)

    model = VICRegPallas(in_shape=(C, H, W),
                         sim_coef=25.0, std_coef=25.0, cov_coef=1.0)

    loss, loss_info = model.forward(image)
    jax.block_until_ready(loss)
    jax.block_until_ready(loss_info)
    assert jnp.isfinite(loss), "loss is not finite"
    print("KERNEL_OK")
</pallas_src>

<mosaic_0001>
module attributes {stable_mosaic.version = 11 : i64} {
  func.func @_fused_vicreg_kernel(%arg0: i32, %arg1: memref<1xi32, #tpu.memory_space<smem>>, %arg2: memref<2x768xbf16, #tpu.memory_space<vmem>>, %arg3: memref<768x128xbf16, #tpu.memory_space<vmem>>, %arg4: memref<1x128xf32, #tpu.memory_space<vmem>>, %arg5: memref<128x256xbf16, #tpu.memory_space<vmem>>, %arg6: memref<1x256xf32, #tpu.memory_space<vmem>>, %arg7: memref<256x128xbf16, #tpu.memory_space<vmem>>, %arg8: memref<1x128xf32, #tpu.memory_space<vmem>>, %arg9: memref<4xf32, #tpu.memory_space<smem>>, %arg10: memref<4x128xf32, #tpu.memory_space<vmem>>) attributes {dimension_semantics = [#tpu.dimension_semantics<arbitrary>], iteration_bounds = array<i64: 1>, scalar_prefetch = 1 : i64, scratch_operands = 1 : i64, tpu.core_type = #tpu.core_type<tc>, window_params = [{transform_indices = @transform_0, window_bounds = array<i64: 2, 768>}, {transform_indices = @transform_1, window_bounds = array<i64: 768, 128>}, {pipeline_mode = #tpu.pipeline_mode<synchronous>, transform_indices = @transform_2, window_bounds = array<i64: 1, 128>}, {pipeline_mode = #tpu.pipeline_mode<synchronous>, transform_indices = @transform_3, window_bounds = array<i64: 128, 256>}, {pipeline_mode = #tpu.pipeline_mode<synchronous>, transform_indices = @transform_4, window_bounds = array<i64: 1, 256>}, {pipeline_mode = #tpu.pipeline_mode<synchronous>, transform_indices = @transform_5, window_bounds = array<i64: 256, 128>}, {pipeline_mode = #tpu.pipeline_mode<synchronous>, transform_indices = @transform_6, window_bounds = array<i64: 1, 128>}, {transform_indices = @transform_7, window_bounds = array<i64: 4>}]} {
    %c0_i32 = arith.constant 0 : i32
    %0 = arith.cmpi eq, %arg0, %c0_i32 : i32
    %1 = arith.extui %0 : i1 to i32
    %c0_i32_0 = arith.constant 0 : i32
    %2 = arith.cmpi ne, %1, %c0_i32_0 : i32
    scf.if %2 {
      %cst_31 = arith.constant 0.000000e+00 : f32
      %87 = vector.broadcast %cst_31 : f32 to vector<4x128xf32>
      %c0_32 = arith.constant 0 : index
      %c0_33 = arith.constant 0 : index
      %88 = vector.load %arg10[%c0_32, %c0_33] : memref<4x128xf32, #tpu.memory_space<vmem>>, vector<4x128xf32>
      tpu.vector_store %arg10[%c0_32, %c0_33], %87 {strides = array<i32>} : memref<4x128xf32, #tpu.memory_space<vmem>>, vector<4x128xf32>,
    } else {
    }
    %c0 = arith.constant 0 : index
    %3 = memref.load %arg1[%c0] : memref<1xi32, #tpu.memory_space<smem>>
    %4 = tpu.iota {dimensions = array<i32: 0>} : vector<2x768xi32>
    %5 = tpu.iota {dimensions = array<i32: 1>} : vector<2x768xi32>
    %c768_i32 = arith.constant 768 : i32
    %6 = arith.muli %arg0, %c768_i32 : i32
    %7 = vector.broadcast %6 : i32 to vector<2x768xi32>
    %8 = arith.addi %5, %7 : vector<2x768xi32>
    %c768_i32_1 = arith.constant 768 : i32
    %9 = vector.broadcast %c768_i32_1 : i32 to vector<2x768xi32>
    %10 = arith.muli %4, %9 : vector<2x768xi32>
    %11 = arith.addi %10, %8 : vector<2x768xi32>
    %12 = vector.broadcast %3 : i32 to vector<2x768xi32>
    %13 = arith.xori %11, %12 : vector<2x768xi32>
    %c16_i32 = arith.constant 16 : i32
    %14 = vector.broadcast %c16_i32 : i32 to vector<2x768xi32>
    %15 = arith.shrsi %13, %14 : vector<2x768xi32>
    %c65535_i32 = arith.constant 65535 : i32
    %16 = vector.broadcast %c65535_i32 : i32 to vector<2x768xi32>
    %17 = arith.andi %15, %16 : vector<2x768xi32>
    %18 = arith.xori %13, %17 : vector<2x768xi32>
    %c-2048144789_i32 = arith.constant -2048144789 : i32
    %19 = vector.broadcast %c-2048144789_i32 : i32 to vector<2x768xi32>
    %20 = arith.muli %18, %19 : vector<2x768xi32>
    %c13_i32 = arith.constant 13 : i32
    %21 = vector.broadcast %c13_i32 : i32 to vector<2x768xi32>
    %22 = arith.shrsi %20, %21 : vector<2x768xi32>
    %c524287_i32 = arith.constant 524287 : i32
    %23 = vector.broadcast %c524287_i32 : i32 to vector<2x768xi32>
    %24 = arith.andi %22, %23 : vector<2x768xi32>
    %25 = arith.xori %20, %24 : vector<2x768xi32>
    %c-1028477387_i32 = arith.constant -1028477387 : i32
    %26 = vector.broadcast %c-1028477387_i32 : i32 to vector<2x768xi32>
    %27 = arith.muli %25, %26 : vector<2x768xi32>
    %c16_i32_2 = arith.constant 16 : i32
    %28 = vector.broadcast %c16_i32_2 : i32 to vector<2x768xi32>
    %29 = arith.shrsi %27, %28 : vector<2x768xi32>
    %c65535_i32_3 = arith.constant 65535 : i32
    %30 = vector.broadcast %c65535_i32_3 : i32 to vector<2x768xi32>
    %31 = arith.andi %29, %30 : vector<2x768xi32>
    %32 = arith.xori %27, %31 : vector<2x768xi32>
    %c8388607_i32 = arith.constant 8388607 : i32
    %33 = vector.broadcast %c8388607_i32 : i32 to vector<2x768xi32>
    %34 = arith.andi %32, %33 : vector<2x768xi32>
    %35 = arith.sitofp %34 : vector<2x768xi32> to vector<2x768xf32>
    %cst = arith.constant 1.19209291E-8 : f32
    %36 = vector.broadcast %cst : f32 to vector<2x768xf32>
    %37 = arith.mulf %35, %36 : vector<2x768xf32>
    %cst_4 = arith.constant 5.000000e-02 : f32
    %38 = vector.broadcast %cst_4 : f32 to vector<2x768xf32>
    %39 = arith.subf %37, %38 : vector<2x768xf32>
    %c1663821211_i32 = arith.constant 1663821211 : i32
    %40 = arith.addi %3, %c1663821211_i32 : i32
    %41 = vector.broadcast %40 : i32 to vector<2x768xi32>
    %42 = arith.xori %11, %41 : vector<2x768xi32>
    %c16_i32_5 = arith.constant 16 : i32
    %43 = vector.broadcast %c16_i32_5 : i32 to vector<2x768xi32>
    %44 = arith.shrsi %42, %43 : vector<2x768xi32>
    %c65535_i32_6 = arith.constant 65535 : i32
    %45 = vector.broadcast %c65535_i32_6 : i32 to vector<2x768xi32>
    %46 = arith.andi %44, %45 : vector<2x768xi32>
    %47 = arith.xori %42, %46 : vector<2x768xi32>
    %c-2048144789_i32_7 = arith.constant -2048144789 : i32
    %48 = vector.broadcast %c-2048144789_i32_7 : i32 to vector<2x768xi32>
    %49 = arith.muli %47, %48 : vector<2x768xi32>
    %c13_i32_8 = arith.constant 13 : i32
    %50 = vector.broadcast %c13_i32_8 : i32 to vector<2x768xi32>
    %51 = arith.shrsi %49, %50 : vector<2x768xi32>
    %c524287_i32_9 = arith.constant 524287 : i32
    %52 = vector.broadcast %c524287_i32_9 : i32 to vector<2x768xi32>
    %53 = arith.andi %51, %52 : vector<2x768xi32>
    %54 = arith.xori %49, %53 : vector<2x768xi32>
    %c-1028477387_i32_10 = arith.constant -1028477387 : i32
    %55 = vector.broadcast %c-1028477387_i32_10 : i32 to vector<2x768xi32>
    %56 = arith.muli %54, %55 : vector<2x768xi32>
    %c16_i32_11 = arith.constant 16 : i32
    %57 = vector.broadcast %c16_i32_11 : i32 to vector<2x768xi32>
    %58 = arith.shrsi %56, %57 : vector<2x768xi32>
    %c65535_i32_12 = arith.constant 65535 : i32
    %59 = vector.broadcast %c65535_i32_12 : i32 to vector<2x768xi32>
    %60 = arith.andi %58, %59 : vector<2x768xi32>
    %61 = arith.xori %56, %60 : vector<2x768xi32>
    %c8388607_i32_13 = arith.constant 8388607 : i32
    %62 = vector.broadcast %c8388607_i32_13 : i32 to vector<2x768xi32>
    %63 = arith.andi %61, %62 : vector<2x768xi32>
    %64 = arith.sitofp %63 : vector<2x768xi32> to vector<2x768xf32>
    %cst_14 = arith.constant 1.19209291E-8 : f32
    %65 = vector.broadcast %cst_14 : f32 to vector<2x768xf32>
    %66 = arith.mulf %64, %65 : vector<2x768xf32>
    %cst_15 = arith.constant 5.000000e-02 : f32
    %67 = vector.broadcast %cst_15 : f32 to vector<2x768xf32>
    %68 = arith.subf %66, %67 : vector<2x768xf32>
    %c0_16 = arith.constant 0 : index
    %c0_17 = arith.constant 0 : index
    %69 = vector.load %arg2[%c0_16, %c0_17] : memref<2x768xbf16, #tpu.memory_space<vmem>>, vector<2x768xbf16>
    %70 = arith.extf %69 : vector<2x768xbf16> to vector<2x768xf32>
    %71 = arith.addf %70, %39 : vector<2x768xf32>
    %72 = arith.truncf %71 : vector<2x768xf32> to vector<2x768xbf16>
    %73 = arith.addf %70, %68 : vector<2x768xf32>
    %74 = arith.truncf %73 : vector<2x768xf32> to vector<2x768xbf16>
    %c0_18 = arith.constant 0 : index
    %c0_19 = arith.constant 0 : index
    %75 = vector.load %arg3[%c0_18, %c0_19] : memref<768x128xbf16, #tpu.memory_space<vmem>>, vector<768x128xbf16>
    %c0_20 = arith.constant 0 : index
    %c0_21 = arith.constant 0 : index
    %76 = vector.load %arg10[%c0_20, %c0_21] : memref<4x128xf32, #tpu.memory_space<vmem>>, vector<2x128xf32>
    %cst_22 = arith.constant dense<0.000000e+00> : vector<2x128xf32>
    %77 = tpu.matmul %72, %75, %cst_22 {dimension_numbers = #tpu.dot_dimension_numbers<[1], [0], [0], [1], [0, 0, 1, 1], [], []>} : vector<2x768xbf16>, vector<768x128xbf16>, vector<2x128xf32> -> vector<2x128xf32>
    %78 = arith.addf %76, %77 : vector<2x128xf32>
    %c0_23 = arith.constant 0 : index
    %c0_24 = arith.constant 0 : index
    %79 = vector.load %arg10[%c0_23, %c0_24] : memref<4x128xf32, #tpu.memory_space<vmem>>, vector<2x128xf32>
    tpu.vector_store %arg10[%c0_23, %c0_24], %78 {strides = array<i32>} : memref<4x128xf32, #tpu.memory_space<vmem>>, vector<2x128xf32>,
    %c2 = arith.constant 2 : index
    %c0_25 = arith.constant 0 : index
    %80 = vector.load %arg10[%c2, %c0_25] : memref<4x128xf32, #tpu.memory_space<vmem>>, vector<2x128xf32>
    %cst_26 = arith.constant dense<0.000000e+00> : vector<2x128xf32>
    %81 = tpu.matmul %74, %75, %cst_26 {dimension_numbers = #tpu.dot_dimension_numbers<[1], [0], [0], [1], [0, 0, 1, 1], [], []>} : vector<2x768xbf16>, vector<768x128xbf16>, vector<2x128xf32> -> vector<2x128xf32>
    %82 = arith.addf %80, %81 : vector<2x128xf32>
    %c2_27 = arith.constant 2 : index
    %c0_28 = arith.constant 0 : index
    %83 = vector.load %arg10[%c2_27, %c0_28] : memref<4x128xf32, #tpu.memory_space<vmem>>, vector<2x128xf32>
    tpu.vector_store %arg10[%c2_27, %c0_28], %82 {strides = array<i32>} : memref<4x128xf32, #tpu.memory_space<vmem>>, vector<2x128xf32>,
    %c0_i32_29 = arith.constant 0 : i32
    %84 = arith.cmpi eq, %arg0, %c0_i32_29 : i32
    %85 = arith.extui %84 : i1 to i32
    %c0_i32_30 = arith.constant 0 : i32
    %86 = arith.cmpi ne, %85, %c0_i32_30 : i32
    scf.if %86 {
      %c0_31 = arith.constant 0 : index
      %c0_32 = arith.constant 0 : index
      %87 = vector.load %arg10[%c0_31, %c0_32] : memref<4x128xf32, #tpu.memory_space<vmem>>, vector<4x128xf32>
      %c0_33 = arith.constant 0 : index
      %c0_34 = arith.constant 0 : index
      %88 = vector.load %arg4[%c0_33, %c0_34] : memref<1x128xf32, #tpu.memory_space<vmem>>, vector<1x128xf32>
      %89 = vector.broadcast %88 : vector<1x128xf32> to vector<4x128xf32>
      %90 = arith.addf %87, %89 : vector<4x128xf32>
      %cst_35 = arith.constant 0.000000e+00 : f32
      %91 = vector.broadcast %cst_35 : f32 to vector<4x128xf32>
      %92 = arith.maximumf %90, %91 : vector<4x128xf32>
      %93 = arith.truncf %92 : vector<4x128xf32> to vector<4x128xbf16>
      %c0_36 = arith.constant 0 : index
      %c0_37 = arith.constant 0 : index
      %94 = vector.load %arg5[%c0_36, %c0_37] : memref<128x256xbf16, #tpu.memory_space<vmem>>, vector<128x256xbf16>
      %cst_38 = arith.constant dense<0.000000e+00> : vector<4x256xf32>
      %95 = tpu.matmul %93, %94, %cst_38 {dimension_numbers = #tpu.dot_dimension_numbers<[1], [0], [0], [1], [0, 0, 1, 1], [], []>} : vector<4x128xbf16>, vector<128x256xbf16>, vector<4x256xf32> -> vector<4x256xf32>
      %c0_39 = arith.constant 0 : index
      %c0_40 = arith.constant 0 : index
      %96 = vector.load %arg6[%c0_39, %c0_40] : memref<1x256xf32, #tpu.memory_space<vmem>>, vector<1x256xf32>
      %97 = vector.broadcast %96 : vector<1x256xf32> to vector<4x256xf32>
      %98 = arith.addf %95, %97 : vector<4x256xf32>
      %cst_41 = arith.constant 0.000000e+00 : f32
      %99 = vector.broadcast %cst_41 : f32 to vector<4x256xf32>
      %100 = arith.maximumf %98, %99 : vector<4x256xf32>
      %101 = arith.truncf %100 : vector<4x256xf32> to vector<4x256xbf16>
      %c0_42 = arith.constant 0 : index
      %c0_43 = arith.constant 0 : index
      %102 = vector.load %arg7[%c0_42, %c0_43] : memref<256x128xbf16, #tpu.memory_space<vmem>>, vector<256x128xbf16>
      %cst_44 = arith.constant dense<0.000000e+00> : vector<4x128xf32>
      %103 = tpu.matmul %101, %102, %cst_44 {dimension_numbers = #tpu.dot_dimension_numbers<[1], [0], [0], [1], [0, 0, 1, 1], [], []>} : vector<4x256xbf16>, vector<256x128xbf16>, vector<4x128xf32> -> vector<4x128xf32>
      %c0_45 = arith.constant 0 : index
      %c0_46 = arith.constant 0 : index
      %104 = vector.load %arg8[%c0_45, %c0_46] : memref<1x128xf32, #tpu.memory_space<vmem>>, vector<1x128xf32>
      %105 = vector.broadcast %104 : vector<1x128xf32> to vector<4x128xf32>
      %106 = arith.addf %103, %105 : vector<4x128xf32>
      %107 = vector.extract_strided_slice %106 {offsets = [0, 0], sizes = [2, 128], strides = [1, 1]} : vector<4x128xf32> to vector<2x128xf32>
      %108 = vector.extract_strided_slice %106 {offsets = [2, 0], sizes = [2, 128], strides = [1, 1]} : vector<4x128xf32> to vector<2x128xf32>
      %109 = arith.subf %107, %108 : vector<2x128xf32>
      %110 = arith.mulf %109, %109 : vector<2x128xf32>
      %111 = vector.shape_cast %110 : vector<2x128xf32> to vector<1x2x128xf32>
      %cst_47 = arith.constant dense<0.000000e+00> : vector<1xf32>
      %112 = vector.multi_reduction <add>, %111, %cst_47 [1, 2] : vector<1x2x128xf32> to vector<1xf32>
      %113 = vector.shape_cast %112 : vector<1xf32> to vector<1x1x1xf32>
      %114 = vector.extract %113[0, 0, 0] : f32 from vector<1x1x1xf32>
      %cst_48 = arith.constant 2.560000e+02 : f32
      %115 = arith.divf %114, %cst_48 : f32
      %cst_49 = arith.constant dense<0.000000e+00> : vector<128xf32>
      %116 = vector.multi_reduction <add>, %107, %cst_49 [0] : vector<2x128xf32> to vector<128xf32>
      %117 = vector.shape_cast %116 : vector<128xf32> to vector<1x128xf32>
      %cst_50 = arith.constant 2.000000e+00 : f32
      %118 = vector.broadcast %cst_50 : f32 to vector<1x128xf32>
      %119 = arith.divf %117, %118 : vector<1x128xf32>
      %120 = vector.broadcast %119 : vector<1x128xf32> to vector<2x128xf32>
      %121 = arith.subf %107, %120 : vector<2x128xf32>
      %cst_51 = arith.constant 1.000000e+00 : f32
      %122 = vector.broadcast %cst_51 : f32 to vector<2x128xf32>
      %123 = arith.mulf %121, %122 : vector<2x128xf32>
      %cst_52 = arith.constant dense<0.000000e+00> : vector<128xf32>
      %124 = vector.multi_reduction <add>, %108, %cst_52 [0] : vector<2x128xf32> to vector<128xf32>
      %125 = vector.shape_cast %124 : vector<128xf32> to vector<1x128xf32>
      %cst_53 = arith.constant 2.000000e+00 : f32
      %126 = vector.broadcast %cst_53 : f32 to vector<1x128xf32>
      %127 = arith.divf %125, %126 : vector<1x128xf32>
      %128 = vector.broadcast %127 : vector<1x128xf32> to vector<2x128xf32>
      %129 = arith.subf %108, %128 : vector<2x128xf32>
      %cst_54 = arith.constant 1.000000e+00 : f32
      %130 = vector.broadcast %cst_54 : f32 to vector<2x128xf32>
      %131 = arith.mulf %129, %130 : vector<2x128xf32>
      %132 = arith.mulf %123, %123 : vector<2x128xf32>
      %cst_55 = arith.constant dense<0.000000e+00> : vector<128xf32>
      %133 = vector.multi_reduction <add>, %132, %cst_55 [0] : vector<2x128xf32> to vector<128xf32>
      %134 = vector.shape_cast %133 : vector<128xf32> to vector<1x128xf32>
      %135 = arith.mulf %131, %131 : vector<2x128xf32>
      %cst_56 = arith.constant dense<0.000000e+00> : vector<128xf32>
      %136 = vector.multi_reduction <add>, %135, %cst_56 [0] : vector<2x128xf32> to vector<128xf32>
      %137 = vector.shape_cast %136 : vector<128xf32> to vector<1x128xf32>
      %cst_57 = arith.constant 9.99999974E-5 : f32
      %138 = vector.broadcast %cst_57 : f32 to vector<1x128xf32>
      %139 = arith.addf %134, %138 : vector<1x128xf32>
      %140 = math.sqrt %139 : vector<1x128xf32>
      %cst_58 = arith.constant 9.99999974E-5 : f32
      %141 = vector.broadcast %cst_58 : f32 to vector<1x128xf32>
      %142 = arith.addf %137, %141 : vector<1x128xf32>
      %143 = math.sqrt %142 : vector<1x128xf32>
      %cst_59 = arith.constant 1.000000e+00 : f32
      %144 = vector.broadcast %cst_59 : f32 to vector<1x128xf32>
      %145 = arith.subf %144, %140 : vector<1x128xf32>
      %cst_60 = arith.constant 0.000000e+00 : f32
      %146 = vector.broadcast %cst_60 : f32 to vector<1x128xf32>
      %147 = arith.maximumf %145, %146 : vector<1x128xf32>
      %148 = vector.shape_cast %147 : vector<1x128xf32> to vector<1x1x128xf32>
      %cst_61 = arith.constant dense<0.000000e+00> : vector<1xf32>
      %149 = vector.multi_reduction <add>, %148, %cst_61 [1, 2] : vector<1x1x128xf32> to vector<1xf32>
      %150 = vector.shape_cast %149 : vector<1xf32> to vector<1x1x1xf32>
      %151 = vector.extract %150[0, 0, 0] : f32 from vector<1x1x1xf32>
      %cst_62 = arith.constant 1.280000e+02 : f32
      %152 = arith.divf %151, %cst_62 : f32
      %cst_63 = arith.constant 2.000000e+00 : f32
      %153 = arith.divf %152, %cst_63 : f32
      %cst_64 = arith.constant 1.000000e+00 : f32
      %154 = vector.broadcast %cst_64 : f32 to vector<1x128xf32>
      %155 = arith.subf %154, %143 : vector<1x128xf32>
      %cst_65 = arith.constant 0.000000e+00 : f32
      %156 = vector.broadcast %cst_65 : f32 to vector<1x128xf32>
      %157 = arith.maximumf %155, %156 : vector<1x128xf32>
      %158 = vector.shape_cast %157 : vector<1x128xf32> to vector<1x1x128xf32>
      %cst_66 = arith.constant dense<0.000000e+00> : vector<1xf32>
      %159 = vector.multi_reduction <add>, %158, %cst_66 [1, 2] : vector<1x1x128xf32> to vector<1xf32>
      %160 = vector.shape_cast %159 : vector<1xf32> to vector<1x1x1xf32>
      %161 = vector.extract %160[0, 0, 0] : f32 from vector<1x1x1xf32>
      %cst_67 = arith.constant 1.280000e+02 : f32
      %162 = arith.divf %161, %cst_67 : f32
      %cst_68 = arith.constant 2.000000e+00 : f32
      %163 = arith.divf %162, %cst_68 : f32
      %164 = arith.addf %153, %163 : f32
      %cst_69 = arith.constant dense<0.000000e+00> : vector<128x128xf32>
      %165 = tpu.matmul %123, %123, %cst_69 {dimension_numbers = #tpu.dot_dimension_numbers<[0], [0], [1], [1], [0, 1, 1, 1], [], []>} : vector<2x128xf32>, vector<2x128xf32>, vector<128x128xf32> -> vector<128x128xf32>
      %cst_70 = arith.constant dense<0.000000e+00> : vector<128x128xf32>
      %166 = tpu.matmul %131, %131, %cst_70 {dimension_numbers = #tpu.dot_dimension_numbers<[0], [0], [1], [1], [0, 1, 1, 1], [], []>} : vector<2x128xf32>, vector<2x128xf32>, vector<128x128xf32> -> vector<128x128xf32>
      %167 = arith.mulf %165, %165 : vector<128x128xf32>
      %168 = vector.shape_cast %167 : vector<128x128xf32> to vector<1x128x128xf32>
      %cst_71 = arith.constant dense<0.000000e+00> : vector<1xf32>
      %169 = vector.multi_reduction <add>, %168, %cst_71 [1, 2] : vector<1x128x128xf32> to vector<1xf32>
      %170 = vector.shape_cast %169 : vector<1xf32> to vector<1x1x1xf32>
      %171 = vector.extract %170[0, 0, 0] : f32 from vector<1x1x1xf32>
      %172 = arith.mulf %134, %134 : vector<1x128xf32>
      %173 = vector.shape_cast %172 : vector<1x128xf32> to vector<1x1x128xf32>
      %cst_72 = arith.constant dense<0.000000e+00> : vector<1xf32>
      %174 = vector.multi_reduction <add>, %173, %cst_72 [1, 2] : vector<1x1x128xf32> to vector<1xf32>
      %175 = vector.shape_cast %174 : vector<1xf32> to vector<1x1x1xf32>
      %176 = vector.extract %175[0, 0, 0] : f32 from vector<1x1x1xf32>
      %177 = arith.subf %171, %176 : f32
      %178 = arith.mulf %166, %166 : vector<128x128xf32>
      %179 = vector.shape_cast %178 : vector<128x128xf32> to vector<1x128x128xf32>
      %cst_73 = arith.constant dense<0.000000e+00> : vector<1xf32>
      %180 = vector.multi_reduction <add>, %179, %cst_73 [1, 2] : vector<1x128x128xf32> to vector<1xf32>
      %181 = vector.shape_cast %180 : vector<1xf32> to vector<1x1x1xf32>
      %182 = vector.extract %181[0, 0, 0] : f32 from vector<1x1x1xf32>
      %183 = arith.mulf %137, %137 : vector<1x128xf32>
      %184 = vector.shape_cast %183 : vector<1x128xf32> to vector<1x1x128xf32>
      %cst_74 = arith.constant dense<0.000000e+00> : vector<1xf32>
      %185 = vector.multi_reduction <add>, %184, %cst_74 [1, 2] : vector<1x1x128xf32> to vector<1xf32>
      %186 = vector.shape_cast %185 : vector<1xf32> to vector<1x1x1xf32>
      %187 = vector.extract %186[0, 0, 0] : f32 from vector<1x1x1xf32>
      %188 = arith.subf %182, %187 : f32
      %189 = arith.addf %177, %188 : f32
      %cst_75 = arith.constant 1.280000e+02 : f32
      %190 = arith.divf %189, %cst_75 : f32
      %cst_76 = arith.constant 2.500000e+01 : f32
      %191 = arith.mulf %cst_76, %115 : f32
      %cst_77 = arith.constant 2.500000e+01 : f32
      %192 = arith.mulf %cst_77, %164 : f32
      %193 = arith.addf %191, %192 : f32
      %cst_78 = arith.constant 1.000000e+00 : f32
      %194 = arith.mulf %cst_78, %190 : f32
      %195 = arith.addf %193, %194 : f32
      %c0_79 = arith.constant 0 : index
      %196 = memref.load %arg9[%c0_79] : memref<4xf32, #tpu.memory_space<smem>>
      memref.store %195, %arg9[%c0_79] : memref<4xf32, #tpu.memory_space<smem>>
      %c1 = arith.constant 1 : index
      %197 = memref.load %arg9[%c1] : memref<4xf32, #tpu.memory_space<smem>>
      memref.store %115, %arg9[%c1] : memref<4xf32, #tpu.memory_space<smem>>
      %c2_80 = arith.constant 2 : index
      %198 = memref.load %arg9[%c2_80] : memref<4xf32, #tpu.memory_space<smem>>
      memref.store %164, %arg9[%c2_80] : memref<4xf32, #tpu.memory_space<smem>>
      %c3 = arith.constant 3 : index
      %199 = memref.load %arg9[%c3] : memref<4xf32, #tpu.memory_space<smem>>
      memref.store %190, %arg9[%c3] : memref<4xf32, #tpu.memory_space<smem>>
    } else {
    }
    return
  }
  func.func @transform_0(%arg0: i32, %arg1: memref<1xi32, #tpu.memory_space<smem>>) -> (i32, i32) {
    %c0_i32 = arith.constant 0 : i32
    %c0_i32_0 = arith.constant 0 : i32
    return %c0_i32, %arg0 : i32, i32
  }
  func.func @transform_1(%arg0: i32, %arg1: memref<1xi32, #tpu.memory_space<smem>>) -> (i32, i32) {
    %c0_i32 = arith.constant 0 : i32
    %c0_i32_0 = arith.constant 0 : i32
    return %arg0, %c0_i32 : i32, i32
  }
  func.func @transform_2(%arg0: i32, %arg1: memref<1xi32, #tpu.memory_space<smem>>) -> (i32, i32) {
    %c0_i32 = arith.constant 0 : i32
    %c0_i32_0 = arith.constant 0 : i32
    %c0_i32_1 = arith.constant 0 : i32
    return %c0_i32, %c0_i32_0 : i32, i32
  }
  func.func @transform_3(%arg0: i32, %arg1: memref<1xi32, #tpu.memory_space<smem>>) -> (i32, i32) {
    %c0_i32 = arith.constant 0 : i32
    %c0_i32_0 = arith.constant 0 : i32
    %c0_i32_1 = arith.constant 0 : i32
    return %c0_i32, %c0_i32_0 : i32, i32
  }
  func.func @transform_4(%arg0: i32, %arg1: memref<1xi32, #tpu.memory_space<smem>>) -> (i32, i32) {
    %c0_i32 = arith.constant 0 : i32
    %c0_i32_0 = arith.constant 0 : i32
    %c0_i32_1 = arith.constant 0 : i32
    return %c0_i32, %c0_i32_0 : i32, i32
  }
  func.func @transform_5(%arg0: i32, %arg1: memref<1xi32, #tpu.memory_space<smem>>) -> (i32, i32) {
    %c0_i32 = arith.constant 0 : i32
    %c0_i32_0 = arith.constant 0 : i32
    %c0_i32_1 = arith.constant 0 : i32
    return %c0_i32, %c0_i32_0 : i32, i32
  }
  func.func @transform_6(%arg0: i32, %arg1: memref<1xi32, #tpu.memory_space<smem>>) -> (i32, i32) {
    %c0_i32 = arith.constant 0 : i32
    %c0_i32_0 = arith.constant 0 : i32
    %c0_i32_1 = arith.constant 0 : i32
    return %c0_i32, %c0_i32_0 : i32, i32
  }
  func.func @transform_7(%arg0: i32, %arg1: memref<1xi32, #tpu.memory_space<smem>>) -> i32 {
    %c0_i32 = arith.constant 0 : i32
    %c0_i32_0 = arith.constant 0 : i32
    return %c0_i32 : i32
  }
}

</mosaic_0001>

<bundles_post_ra>
// kernel: tpu_custom_call.1
= control target key start
LH: loop header
LB: loop body
LE: loop exit
PB: predicated region body
PF: predicated region fallthrough
CT: control target
= control target key end

     0   :  { %14 = vsyncpa [#allocation6], 0  ;;  %s3215_s0 = inlined_call_operand.<no memory space> [shape: s32[1], index: 0, kind: input, shape index: {}]   ;;  %s3216_s1 = inlined_call_operand.hbm [shape: bf16[2,768], index: 1, kind: input, shape index: {}]   ;;  %s3217_s2 = inlined_call_operand.hbm [shape: bf16[768,128], index: 2, kind: input, shape index: {}]   ;;  %s3218_s3 = inlined_call_operand.vmem [shape: f32[1,128], index: 3, kind: input, shape index: {}]   ;;  %s3219_s4 = inlined_call_operand.hbm [shape: bf16[128,256], index: 4, kind: input, shape index: {}]   ;;  %s3220_s5 = inlined_call_operand.vmem [shape: f32[1,256], index: 5, kind: input, shape index: {}]   ;;  %s3221_s6 = inlined_call_operand.hbm [shape: bf16[256,128], index: 6, kind: input, shape index: {}]   ;;  %s3222_s7 = inlined_call_operand.vmem [shape: f32[1,128], index: 7, kind: input, shape index: {}]   ;;  %s3223_s8 = inlined_call_operand.hbm [shape: f32[4], index: 8, kind: output, shape index: {}]  }
   0x1   :  { %15 = vsyncpa [#allocation9], 0 }
   0x2   :  { %16 = vsyncpa [#allocation12], 0 }
   0x3   :  { %17 = vsyncpa [#allocation7], 0  ;;  %s2765_s27 = smov [#allocation8]   ;;  %s2659_s9 = scalar_lea.hbm %s3217_s2, 6144 }
   0x4   :  { %s33_s28 = sshll.u32 %s2765_s27, 4  ;;  %p2660_p0 = scmp.ne.s32.totalorder %s3217_s2, %s2659_s9  ;;  %s34_s28 = int_to_ptr.vmem [resolvable:$true] %s33_s28 }
   0x5   :  { %p2663_p1 = scmp.lt.u32.totalorder %s2659_s9, %s3217_s2 }
   0x7   :  { %p2665_p2 = pnand %p2663_p1, %p2660_p0 }
   0x9   :  { %2668 = shalt.err (!%p2665_p2)
}
   0xa   :  { %s2669_s14 = scalar_lea.vmem %s34_s28, 6144  ;;  %p2674_p4 = scmp.lt.s32.totalorder %s34_s28, %s34_s28 }
   0xb   :  { %p2670_p3 = scmp.ne.s32.totalorder %s34_s28, %s2669_s14  ;;  %p2675_p5 = scmp.lt.s32.totalorder %s2669_s14, %s2669_s14 }
   0xd   :  { %p2676_p6 = por %p2675_p5, %p2674_p4 }
   0xf   :  { %p2677_p7 = pnand %p2676_p6, %p2670_p3 }
  0x11   :  { %2680 = shalt.err (!%p2677_p7)
}
  0x12   :  { %s2766_s15 = smov 64   ;;  %s2767_s16 = smov 4  }
  0x13   :  { %39 = dma.hbm_to_vmem [thread:$0]  %s3217_s2, 6144, %s34_s28, [#allocation9], %s2766_s15, %s2766_s15, %s2767_s16  }
  0x14   :  { %s2768_s19 = smov [#allocation5]   ;;  %s2769_s21 = smov [#allocation10]  }
  0x15   :  { %s24_s20 = sshll.u32 %s2768_s19, 4  ;;  %s47_s22 = sshll.u32 %s2769_s21, 4  ;;  %s25_s20 = int_to_ptr.vmem [resolvable:$true] %s24_s20  ;;  %s48_s22 = int_to_ptr.vmem [resolvable:$true] %s47_s22 }
  0x16   :  { %s2681_s25 = scalar_lea.hbm %s3216_s1, 96 }
  0x17   :  { %p2682_p8 = scmp.ne.s32.totalorder %s3216_s1, %s2681_s25  ;;  %p2685_p9 = scmp.lt.u32.totalorder %s2681_s25, %s3216_s1 }
  0x19   :  { %p2687_p10 = pnand %p2685_p9, %p2682_p8 }
  0x1b   :  { %2690 = shalt.err (!%p2687_p10)
}
  0x1c   :  { %s2691_s2 = scalar_lea.vmem %s25_s20, 96  ;;  %p2696_p12 = scmp.lt.s32.totalorder %s25_s20, %s25_s20 }
  0x1d   :  { %p2692_p11 = scmp.ne.s32.totalorder %s25_s20, %s2691_s2  ;;  %p2697_p13 = scmp.lt.s32.totalorder %s2691_s2, %s2691_s2 }
  0x1f   :  { %p2698_p0 = por %p2697_p13, %p2696_p12 }
  0x21   :  { %p2699_p1 = pnand %p2698_p0, %p2692_p11 }
  0x23   :  { %2702 = shalt.err (!%p2699_p1)
}
  0x24   :  { %27 = dma.hbm_to_vmem [thread:$0]  %s3216_s1, 96, %s25_s20, [#allocation6]  }
  0x25   :  { %s2703_s12 = scalar_lea.hbm %s3219_s4, 2048 }
  0x26   :  { %p2704_p2 = scmp.ne.s32.totalorder %s3219_s4, %s2703_s12  ;;  %p2707_p3 = scmp.lt.u32.totalorder %s2703_s12, %s3219_s4 }
  0x28   :  { %p2709_p4 = pnand %p2707_p3, %p2704_p2 }
  0x2a   :  { %2712 = shalt.err (!%p2709_p4)
}
  0x2b   :  { %s2713_s19 = scalar_lea.vmem %s48_s22, 2048  ;;  %p2718_p6 = scmp.lt.s32.totalorder %s48_s22, %s48_s22 }
  0x2c   :  { %p2714_p5 = scmp.ne.s32.totalorder %s48_s22, %s2713_s19  ;;  %p2719_p7 = scmp.lt.s32.totalorder %s2713_s19, %s2713_s19 }
  0x2e   :  { %p2720_p8 = por %p2719_p7, %p2718_p6 }
  0x30   :  { %p2721_p9 = pnand %p2720_p8, %p2714_p5 }
  0x32   :  { %2724 = shalt.err (!%p2721_p9)
}
  0x33   :  { %s2770_s1 = smov 128   ;;  %s2771_s20 = smov 8  }
  0x34   :  { %53 = dma.hbm_to_vmem [thread:$0]  %s3219_s4, 2048, %s48_s22, [#allocation9], %s2770_s1, %s2770_s1, %s2771_s20  }
  0x35   :  { %s2772_s24 = smov [#allocation11]   ;;  %s2725_s29 = scalar_lea.hbm %s3221_s6, 2048 }
  0x36   :  { %s61_s25 = sshll.u32 %s2772_s24, 4  ;;  %p2726_p10 = scmp.ne.s32.totalorder %s3221_s6, %s2725_s29  ;;  %s62_s25 = int_to_ptr.vmem [resolvable:$true] %s61_s25 }
  0x37   :  { %p2729_p11 = scmp.lt.u32.totalorder %s2725_s29, %s3221_s6 }
  0x39   :  { %p2731_p12 = pnand %p2729_p11, %p2726_p10 }
  0x3b   :  { %2734 = shalt.err (!%p2731_p12)
}
  0x3c   :  { %s2735_s10 = scalar_lea.vmem %s62_s25, 2048  ;;  %p2740_p0 = scmp.lt.s32.totalorder %s62_s25, %s62_s25 }
  0x3d   :  { %p2736_p13 = scmp.ne.s32.totalorder %s62_s25, %s2735_s10  ;;  %p2741_p1 = scmp.lt.s32.totalorder %s2735_s10, %s2735_s10 }
  0x3f   :  { %p2742_p2 = por %p2741_p1, %p2740_p0 }
  0x41   :  { %p2743_p3 = pnand %p2742_p2, %p2736_p13 }
  0x43   :  { %2746 = shalt.err (!%p2743_p3)
}
  0x44   :  { %67 = dma.hbm_to_vmem [thread:$0]  %s3221_s6, 2048, %s62_s25, [#allocation12], %s2766_s15, %s2766_s15, %s2767_s16  }
  0x45   :  { %2757 = dma.done.wait [#allocation6], 96  }
  0x46   :  { %2758 = vsyncadd [#allocation6], 4294967200 }
  0x47   :  { %2759 = dma.done.wait [#allocation9], 8192  }
  0x48   :  { %2760 = vsyncadd [#allocation9], 4294959104 }
  0x49   :  { %2761 = dma.done.wait [#allocation12], 2048  }
  0x4a   :  { %2762 = vsyncadd [#allocation12], 4294965248  ;;  %v2876_v0 = vld [vmem:[#allocation8 + $0x40] sm:$0xff]   ;;  %v89_v3 = vlaneseq  ;;  %v2887_v5 = vld [vmem:[#allocation8 + $0x48] sm:$0xff]   ;;  %v2942_v25 = vstv %s3215_s0  ;;  %s210_s12 = sadd.s32 1663821211, %s3215_s0 }
  0x4b   :  { %v2878_v1 = vld [vmem:[#allocation8] sm:$0xff]   ;;  %2301 = vmatprep.subr.bf16.mxu0 %v2876_v0  ;;  %v2890_v6 = vld [vmem:[#allocation8 + $0x8] sm:$0xff]   ;;  %v2903_v11 = vld [vmem:[#allocation8 + $0x50] sm:$0xff]   ;;  %vm1436_vm0 = vcmask 1041408   ;;  %vm1506_vm1 = vcmask 1040384   ;;  %vm1574_vm6 = vcmask 15360  }
  0x4c   :  { %v2881_v2 = vld [vmem:[#allocation8 + $0xc0] sm:$0xff]   ;;  %2302 = vmatpush3.bf16.msra.mxu0 %v2878_v1  ;;  %v2893_v7 = vld [vmem:[#allocation8 + $0xc8] sm:$0xff]   ;;  %v2895_v8 = vshrl.u32 %v89_v3, 7  ;;  %v2900_v10 = vand.u32 127, %v89_v3  ;;  %v2906_v12 = vld [vmem:[#allocation8 + $0x10] sm:$0xff]  }
  0x4d   :  { %v2884_v4 = vld [vmem:[#allocation8 + $0x80] sm:$0xff]   ;;  %2323 = vmatprep.subr.bf16.mxu1 %v2881_v2  ;;  %2303 = vmatprep.subr.bf16.mxu0 %v2887_v5  ;;  %v2898_v9 = vld [vmem:[#allocation8 + $0x88] sm:$0xff]   ;;  %v2909_v13 = vld [vmem:[#allocation8 + $0xd0] sm:$0xff]  }
  0x4e   :  { %2324 = vmatpush3.bf16.msra.mxu1 %v2884_v4  ;;  %v2912_v14 = vmul.u32 768, %v2895_v8  ;;  %v2915_v15 = vld [vmem:[#allocation8 + $0x90] sm:$0xff]   ;;  %v93_v16 = vadd.s32 128, %v2900_v10  ;;  %v2919_v17 = vld [vmem:[#allocation8 + $0x58] sm:$0xff]   ;;  %v94_v18 = vadd.s32 256, %v2900_v10  ;;  %v95_v20 = vadd.s32 384, %v2900_v10 }
  0x4f   :  { %2325 = vmatprep.subr.bf16.mxu1 %v2893_v7  ;;  %v2923_v19 = vld [vmem:[#allocation8 + $0x18] sm:$0xff]   ;;  %v2945_v26 = vld [vmem:[#allocation8 + $0x60] sm:$0xff]   ;;  %v2967_v34 = vld [vmem:[#allocation8 + $0x68] sm:$0xff]   ;;  %v96_v55 = vadd.s32 512, %v2900_v10  ;;  %v97_v57 = vadd.s32 640, %v2900_v10 }
  0x50   :  { %2304 = vmatpush3.bf16.msra.mxu0 %v2890_v6  ;;  %v2927_v21 = vld [vmem:[#allocation8 + $0xd8] sm:$0xff]   ;;  %v2931_v22 = vadd.s32 %v2912_v14, %v2900_v10  ;;  %v2937_v24 = vadd.s32 %v2912_v14, %v93_v16  ;;  %v2948_v27 = vadd.s32 %v2912_v14, %v94_v18  ;;  %v2951_v28 = vld [vmem:[#allocation8 + $0x20] sm:$0xff]   ;;  %v2954_v29 = vadd.s32 %v2912_v14, %v95_v20  ;;  %v2972_v36 = vld [vmem:[#allocation8 + $0x28] sm:$0xff]  }
  0x51   :  { %2305 = vmatprep.subr.bf16.mxu0 %v2903_v11  ;;  %v2934_v23 = vld [vmem:[#allocation8 + $0x98] sm:$0xff]   ;;  %v2957_v30 = vld [vmem:[#allocation8 + $0xe0] sm:$0xff]   ;;  %v2977_v38 = vld [vmem:[#allocation8 + $0xe8] sm:$0xff]   ;;  %v111_v18 = vadd.s32 %v2912_v14, %v96_v55  ;;  %v112_v20 = vadd.s32 %v2912_v14, %v97_v57  ;;  %v2773_v55 = vmov 1983009808  }
  0x52   :  { %2326 = vmatpush3.bf16.msra.mxu1 %v2898_v9  ;;  %v114_v31 = vxor.u32 %v2942_v25, %v2931_v22  ;;  %v2962_v32 = vld [vmem:[#allocation8 + $0xa0] sm:$0xff]   ;;  %v115_v33 = vxor.u32 %v2942_v25, %v2937_v24  ;;  %v116_v35 = vxor.u32 %v2942_v25, %v2948_v27  ;;  %v117_v37 = vxor.u32 %v2942_v25, %v2954_v29  ;;  %v2980_v40 = vld [vmem:[#allocation8 + $0xa8] sm:$0xff]   ;;  %v2983_v42 = vld [vmem:[#allocation8 + $0x70] sm:$0xff]  }
  0x53   :  { %2327 = vmatprep.subr.bf16.mxu1 %v2909_v13  ;;  %3230 = vst [vmem:[#allocation18_spill] sm:$0xff] %v2977_v38  ;;  %3231 = vst [vmem:[#allocation19_spill] sm:$0xff] %v2980_v40  ;;  %v2986_v44 = vld [vmem:[#allocation8 + $0x30] sm:$0xff]   ;;  %v2995_v48 = vld [vmem:[#allocation8 + $0x78] sm:$0xff]  }
  0x54   :  { %2306 = vmatpush3.bf16.msra.mxu0 %v2906_v12  ;;  %v2137_v39 = vshrl.u32 %v114_v31, 16  ;;  %v2138_v41 = vshrl.u32 %v115_v33, 16  ;;  %v2139_v43 = vshrl.u32 %v116_v35, 16  ;;  %v2140_v45 = vshrl.u32 %v117_v37, 16  ;;  %v2989_v46 = vld [vmem:[#allocation8 + $0xf0] sm:$0xff]   ;;  %v2998_v51 = vld [vmem:[#allocation8 + $0x38] sm:$0xff]  }
  0x55   :  { %2307 = vmatprep.subr.bf16.mxu0 %v2919_v17  ;;  %3232 = vst [vmem:[#allocation20_spill] sm:$0xff] %v2989_v46  ;;  %v2992_v47 = vld [vmem:[#allocation8 + $0xb0] sm:$0xff]   ;;  %v3001_v54 = vld [vmem:[#allocation8 + $0xf8] sm:$0xff]   ;;  %v3013_v3 = vld [vmem:[#allocation8 + $0x140] sm:$0xff]  }
  0x56   :  { %2328 = vmatpush3.bf16.msra.mxu1 %v2915_v15  ;;  %3233 = vst [vmem:[#allocation21_spill] sm:$0xff] %v2992_v47  ;;  %v132_v49 = vxor.u32 %v2137_v39, %v114_v31  ;;  %v133_v50 = vxor.u32 %v2138_v41, %v115_v33  ;;  %v134_v52 = vxor.u32 %v2139_v43, %v116_v35  ;;  %3234 = vst [vmem:[#allocation22_spill] sm:$0xff] %v3001_v54  ;;  %v3005_v56 = vld [vmem:[#allocation8 + $0xb8] sm:$0xff]  }
  0x57   :  { %2329 = vmatprep.subr.bf16.mxu1 %v2927_v21  ;;  %v135_v53 = vxor.u32 %v2140_v45, %v117_v37  ;;  %3235 = vst [vmem:[#allocation23_spill] sm:$0xff] %v3005_v56  ;;  %v211_v43 = vstv %s210_s12  ;;  %s2747_s12 = scalar_lea.hbm %s3223_s8, 16 }
  0x58   :  { %2308 = vmatpush3.bf16.msra.mxu0 %v2923_v19  ;;  %v138_v58 = vmul.u32 2246822507, %v132_v49  ;;  %v139_v59 = vmul.u32 2246822507, %v133_v50  ;;  %v118_v50 = vxor.u32 %v2942_v25, %v111_v18  ;;  %p2748_p4 = scmp.ne.s32.totalorder %s3223_s8, %s2747_s12  ;;  %p2751_p5 = scmp.lt.u32.totalorder %s2747_s12, %s3223_s8 }
  0x59   :  { %2309 = vmatprep.subr.bf16.mxu0 %v2945_v26  ;;  %v140_v60 = vmul.u32 2246822507, %v134_v52  ;;  %v141_v61 = vmul.u32 2246822507, %v135_v53 }
  0x5a   :  { %2330 = vmatpush3.bf16.msra.mxu1 %v2934_v23  ;;  %v2143_v62 = vshrl.u32 %v138_v58, 13  ;;  %v2144_v63 = vshrl.u32 %v139_v59, 13  ;;  %p2753_p6 = pnand %p2751_p5, %p2748_p4 }
  0x5b   :  { %2331 = vmatprep.subr.bf16.mxu1 %v2957_v30  ;;  %v2145_v16 = vshrl.u32 %v140_v60, 13  ;;  %v2146_v10 = vshrl.u32 %v141_v61, 13 }
  0x5c   :  { %2310 = vmatpush3.bf16.msra.mxu0 %v2951_v28  ;;  %v156_v31 = vxor.u32 %v2143_v62, %v138_v58  ;;  %v157_v33 = vxor.u32 %v2144_v63, %v139_v59  ;;  %v212_v58 = vxor.u32 %v211_v43, %v2931_v22  ;;  %v213_v59 = vxor.u32 %v211_v43, %v2937_v24 }
  0x5d   :  { %2311 = vmatprep.subr.bf16.mxu0 %v2967_v34  ;;  %v158_v35 = vxor.u32 %v2145_v16, %v140_v60  ;;  %v159_v37 = vxor.u32 %v2146_v10, %v141_v61  ;;  %v214_v62 = vxor.u32 %v211_v43, %v2948_v27  ;;  %v215_v63 = vxor.u32 %v211_v43, %v2954_v29 }
  0x5e   :  { %2332 = vmatpush3.bf16.msra.mxu1 %v2962_v32  ;;  %v162_v39 = vmul.u32 3266489909, %v156_v31  ;;  %v163_v41 = vmul.u32 3266489909, %v157_v33  ;;  %v2141_v31 = vshrl.u32 %v118_v50, 16  ;;  %v2162_v22 = vshrl.u32 %v213_v59, 16 }
  0x5f   :  { %2333 = vmatprep.subr.bf16.mxu1 %v2977_v38  ;;  %v164_v45 = vmul.u32 3266489909, %v158_v35  ;;  %v165_v49 = vmul.u32 3266489909, %v159_v37  ;;  %v216_v37 = vxor.u32 %v211_v43, %v111_v18  ;;  %v2163_v27 = vshrl.u32 %v214_v62, 16 }
  0x60   :  { %2312 = vmatpush3.bf16.msra.mxu0 %v2972_v36  ;;  %v2149_v52 = vshrl.u32 %v162_v39, 16  ;;  %v2150_v53 = vshrl.u32 %v163_v41, 16 }
  0x61   :  { %2313 = vmatprep.subr.bf16.mxu0 %v2983_v42  ;;  %v2151_v14 = vshrl.u32 %v164_v45, 16  ;;  %v2152_v57 = vshrl.u32 %v165_v49, 16 }
  0x62   :  { %2334 = vmatpush3.bf16.msra.mxu1 %v2980_v40  ;;  %v180_v60 = vxor.u32 %v2149_v52, %v162_v39  ;;  %v181_v61 = vxor.u32 %v2150_v53, %v163_v41  ;;  %v2164_v53 = vshrl.u32 %v215_v63, 16 }
  0x63   :  { %2335 = vmatprep.subr.bf16.mxu1 %v2989_v46  ;;  %v182_v16 = vxor.u32 %v2151_v14, %v164_v45  ;;  %v183_v10 = vxor.u32 %v2152_v57, %v165_v49  ;;  %v2161_v46 = vshrl.u32 %v212_v58, 16  ;;  %v2165_v57 = vshrl.u32 %v216_v37, 16 }
  0x64   :  { %2314 = vmatpush3.bf16.msra.mxu0 %v2986_v44  ;;  %v186_v33 = vand.u32 8388607, %v180_v60  ;;  %v187_v35 = vand.u32 8388607, %v181_v61 }
  0x65   :  { %2315 = vmatprep.subr.bf16.mxu0 %v2995_v48  ;;  %v3031_v38 = vxor.u32 %v2165_v57, %v216_v37 }
  0x66   :  { %2336 = vmatpush3.bf16.msra.mxu1 %v2992_v47  ;;  %v189_v47 = vand.u32 8388607, %v183_v10  ;;  %v192_v40 = vcvt.s32.f32 %v186_v33  ;;  %v193_v24 = vcvt.s32.f32 %v187_v35  ;;  %v136_v10 = vxor.u32 %v2141_v31, %v118_v50 }
  0x67   :  { %2337 = vmatprep.subr.bf16.mxu1 %v3001_v54  ;;  %v188_v54 = vand.u32 8388607, %v182_v16  ;;  %v231_v35 = vxor.u32 %v2162_v22, %v213_v59 }
  0x68   :  { %2316 = vmatpush3.bf16.msra.mxu0 %v2998_v51  ;;  %v195_v52 = vcvt.s32.f32 %v189_v47  ;;  %v198_v29 = vmul.f32 1.1920929e-08, %v192_v40  ;;  %v199_v45 = vmul.f32 1.1920929e-08, %v193_v24  ;;  %v232_v24 = vxor.u32 %v2163_v27, %v214_v62 }
  0x69   :  { %2345 = vmatprep.subr.bf16.mxu0 %v3013_v3  ;;  %v194_v41 = vcvt.s32.f32 %v188_v54  ;;  %v230_v54 = vxor.u32 %v2161_v46, %v212_v58 }
  0x6a   :  { %2338 = vmatpush3.bf16.msra.mxu1 %v3005_v56  ;;  %v320_v56 = vunpack.c.l.s4 %v2773_v55  ;;  %v217_v55 = vxor.u32 %v211_v43, %v112_v20  ;;  %v201_v14 = vmul.f32 1.1920929e-08, %v195_v52  ;;  %v2155_v61 = vadd.f32 -0.05, %v198_v29 }
  0x6b   :  { %2367 = vmatprep.subr.bf16.mxu1 %v2876_v0  ;;  %v119_v0 = vxor.u32 %v2942_v25, %v112_v20  ;;  %v200_v49 = vmul.f32 1.1920929e-08, %v194_v41  ;;  %v2156_v18 = vadd.f32 -0.05, %v199_v45  ;;  %v233_v52 = vxor.u32 %v2164_v53, %v215_v63 }
  0x6c   :  { %v321_v39 = vunpack.c.0.s8 %v320_v56  ;;  %v2166_v60 = vshrl.u32 %v217_v55, 16  ;;  %v2158_v16 = vadd.f32 -0.05, %v201_v14  ;;  %v3028_v56 = vld [vmem:[#allocation5] sm:$0x3f] }
  0x6d   :  { %v2142_v25 = vshrl.u32 %v119_v0, 16  ;;  %v2157_v43 = vadd.f32 -0.05, %v200_v49  ;;  %v317_v47 = vcombine.low %v2155_v61, %v2156_v18  ;;  %v309_v29 = vunpack.c.l.bf16 %v3028_v56 }
  0x6e   :  { %v3026_v20 = vsub.s32 %v321_v39, %v2895_v8  ;;  %v142_v45 = vmul.u32 2246822507, %v136_v10  ;;  %v236_v50 = vmul.u32 2246822507, %v230_v54  ;;  %v3035_v31 = vxor.u32 %v2166_v60, %v217_v55 }
  0x6f   :  { %v137_v33 = vxor.u32 %v2142_v25, %v119_v0  ;;  %v318_v40 = vcombine.low %v2157_v43, %v2158_v16  ;;  %v237_v0 = vmul.u32 2246822507, %v231_v35  ;;  %v238_v59 = vmul.u32 2246822507, %v232_v24 }
  0x70   :  { %v325_v41 = vrot.slane %v317_v47, %v3026_v20  ;;  %v2147_v46 = vshrl.u32 %v142_v45, 13  ;;  %v239_v62 = vmul.u32 2246822507, %v233_v52  ;;  %v2167_v22 = vshrl.u32 %v236_v50, 13 }
  0x71   :  { %v332_v39 = vrot.slane %v318_v40, %v3026_v20  ;;  %v143_v49 = vmul.u32 2246822507, %v137_v33  ;;  %v2168_v27 = vshrl.u32 %v237_v0, 13  ;;  %v240_v63 = vmul.u32 2246822507, %v3031_v38 }
  0x72   :  { %v160_v53 = vxor.u32 %v2147_v46, %v142_v45  ;;  %v2169_v57 = vshrl.u32 %v238_v59, 13  ;;  %v2170_v61 = vshrl.u32 %v239_v62, 13  ;;  %v254_v18 = vxor.u32 %v2167_v22, %v236_v50  ;;  %v3045_v22 = vld [vmem:[#allocation8 + $0x148] sm:$0xff]  }
  0x73   :  { %v333_v25 = vcombine.low %v325_v41, %v332_v39  ;;  %v2148_v58 = vshrl.u32 %v143_v49, 13  ;;  %v255_v43 = vxor.u32 %v2168_v27, %v237_v0  ;;  %v241_v55 = vmul.u32 2246822507, %v3035_v31  ;;  %v3042_v41 = vld [vmem:[#allocation8 + $0x100] sm:$0xff]  }
  0x74   :  { %v166_v10 = vmul.u32 3266489909, %v160_v53  ;;  %v256_v47 = vxor.u32 %v2169_v57, %v238_v59  ;;  %v257_v54 = vxor.u32 %v2170_v61, %v239_v62  ;;  %v260_v35 = vmul.u32 3266489909, %v254_v18 }
  0x75   :  { %v344_v37 = vadd.f32 %v333_v25, %v309_v29  ;;  %v161_v14 = vxor.u32 %v2148_v58, %v143_v49  ;;  %v261_v38 = vmul.u32 3266489909, %v255_v43  ;;  %v2171_v18 = vshrl.u32 %v240_v63, 13 }
  0x76   :  { %v2153_v39 = vshrl.u32 %v166_v10, 16  ;;  %v262_v49 = vmul.u32 3266489909, %v256_v47  ;;  %v263_v50 = vmul.u32 3266489909, %v257_v54  ;;  %v2173_v0 = vshrl.u32 %v260_v35, 16 }
  0x77   :  { %v355_v60 = vrot.slane %v344_v37, %v3026_v20  ;;  %v348_v16 = vcombine.high %v344_v37, %v344_v37  ;;  %v167_v33 = vmul.u32 3266489909, %v161_v14  ;;  %v2174_v62 = vshrl.u32 %v261_v38, 16  ;;  %v3047_v14 = vld [vmem:[#allocation8 + $0x108] sm:$0xff]  }
  0x78   :  { %v184_v58 = vxor.u32 %v2153_v39, %v166_v10  ;;  %v2175_v27 = vshrl.u32 %v262_v49, 16  ;;  %v2176_v37 = vshrl.u32 %v263_v50, 16  ;;  %v278_v61 = vxor.u32 %v2173_v0, %v260_v35  ;;  %v3050_v10 = vld [vmem:[#allocation8 + $0x150] sm:$0xff]  }
  0x79   :  { %v363_v40 = vcombine.high %v355_v60, %v355_v60  ;;  %v379_v24 = vpack.c.bf16 %v355_v60, %v355_v60  ;;  %v362_v52 = vrot.slane %v348_v16, %v3026_v20  ;;  %v2154_v45 = vshrl.u32 %v167_v33, 16 }
  0x7a   :  { %v190_v57 = vand.u32 8388607, %v184_v58  ;;  %v279_v60 = vxor.u32 %v2174_v62, %v261_v38  ;;  %v280_v16 = vxor.u32 %v2175_v27, %v262_v49  ;;  %v281_v47 = vxor.u32 %v2176_v37, %v263_v50  ;;  %v3054_v38 = vld [vmem:[#allocation8 + $0x110] sm:$0xff]  }
  0x7b   :  { %v380_v31 = vpack.c.bf16 %v363_v40, %v363_v40  ;;  %v364_v25 = vcombine.high %v362_v52, %v362_v52  ;;  %v381_v46 = vpack.c.bf16 %v362_v52, %v362_v52  ;;  %v185_v59 = vxor.u32 %v2154_v45, %v167_v33 }
  0x7c   :  { %v196_v33 = vcvt.s32.f32 %v190_v57  ;;  %v284_v54 = vand.u32 8388607, %v278_v61  ;;  %v2172_v40 = vshrl.u32 %v241_v55, 13  ;;  %v258_v52 = vxor.u32 %v2171_v18, %v240_v63 }
  0x7d   :  { %876 = vmatprep.mubr.bf16.mxu0 %v380_v31  ;;  %v382_v53 = vpack.c.bf16 %v364_v25, %v364_v25  ;;  %v191_v43 = vand.u32 8388607, %v185_v59  ;;  %v285_v35 = vand.u32 8388607, %v279_v60  ;;  %v286_v45 = vand.u32 8388607, %v280_v16 }
  0x7e   :  { %877 = vmatmul.mubr.bf16.vlgmr.msra.gmra.mrb[0].mxu0 %v379_v24  ;;  %v287_v24 = vand.u32 8388607, %v281_v47  ;;  %v202_v49 = vmul.f32 1.1920929e-08, %v196_v33  ;;  %v290_v50 = vcvt.s32.f32 %v284_v54  ;;  %v259_v0 = vxor.u32 %v2172_v40, %v241_v55  ;;  %v3057_v25 = vld [vmem:[#allocation8 + $0x158] sm:$0xff]   ;;  %v3066_v16 = vld [vmem:[#allocation8 + $0x160] sm:$0xff]  }
  0x7f   :  { %2346 = vmatpush3.bf16.msra.mxu0 %v3042_v41  ;;  %916 = vmatprep.mubr.bf16.mxu1 %v382_v53  ;;  %v197_v39 = vcvt.s32.f32 %v191_v43  ;;  %v264_v31 = vmul.u32 3266489909, %v258_v52  ;;  %v292_v58 = vcvt.s32.f32 %v286_v45  ;;  %v3062_v55 = vld [vmem:[#allocation8 + $0x118] sm:$0xff]   ;;  %v310_v60 = vunpack.c.h.bf16 %v3028_v56  ;;  %v3072_v45 = vld [vmem:[#allocation8 + $0x120] sm:$0xff]  }
  0x80   :  { %917 = vmatmul.mubr.bf16.vlgmr.msra.gmra.mrb[0].mxu1 %v381_v46  ;;  %2347 = vmatprep.subr.bf16.mxu0 %v3045_v22  ;;  %v291_v46 = vcvt.s32.f32 %v285_v35  ;;  %v293_v59 = vcvt.s32.f32 %v287_v24  ;;  %v2159_v62 = vadd.f32 -0.05, %v202_v49  ;;  %v296_v27 = vmul.f32 1.1920929e-08, %v290_v50  ;;  %v3075_v50 = vld [vmem:[#allocation8 + $0x168] sm:$0xff]  }
  0x81   :  { %2368 = vmatpush3.bf16.msra.mxu1 %v2878_v1  ;;  %v203_v63 = vmul.f32 1.1920929e-08, %v197_v39  ;;  %v265_v37 = vmul.u32 3266489909, %v259_v0  ;;  %v298_v57 = vmul.f32 1.1920929e-08, %v292_v58 }
  0x82   :  { %2369 = vmatprep.subr.bf16.mxu1 %v2887_v5  ;;  %v297_v53 = vmul.f32 1.1920929e-08, %v291_v46  ;;  %v299_v5 = vmul.f32 1.1920929e-08, %v293_v59  ;;  %v2179_v61 = vadd.f32 -0.05, %v296_v27 }
  0x83   :  { %2348 = vmatpush3.bf16.msra.mxu0 %v3047_v14  ;;  %v2160_v1 = vadd.f32 -0.05, %v203_v63  ;;  %v2177_v18 = vshrl.u32 %v264_v31, 16  ;;  %v2178_v43 = vshrl.u32 %v265_v37, 16  ;;  %v2181_v54 = vadd.f32 -0.05, %v298_v57 }
  0x84   :  { %2349 = vmatprep.subr.bf16.mxu0 %v3050_v10  ;;  %v2180_v33 = vadd.f32 -0.05, %v297_v53  ;;  %v2182_v40 = vadd.f32 -0.05, %v299_v5  ;;  %v2611_v5 = vld [vmem:[#allocation8 + $0x170] sm:$0xff]  }
  0x85   :  { %2370 = vmatpush3.bf16.msra.mxu1 %v2890_v6  ;;  %v334_v47 = vcombine.low %v2159_v62, %v2160_v1  ;;  %v282_v52 = vxor.u32 %v2177_v18, %v264_v31  ;;  %v283_v6 = vxor.u32 %v2178_v43, %v265_v37  ;;  %v3085_v37 = vld [vmem:[#allocation8 + $0x128] sm:$0xff]   ;;  %v2612_v43 = vld [vmem:[#allocation8 + $0x130] sm:$0xff]  }
  0x86   :  { %2371 = vmatprep.subr.bf16.mxu1 %v2903_v11  ;;  %v391_v35 = vcombine.low %v2179_v61, %v2180_v33  ;;  %v392_v11 = vcombine.low %v2181_v54, %v2182_v40  ;;  %v2613_v33 = vld [vmem:[#allocation8 + $0x178] sm:$0xff]  }
  0x87   :  { %2350 = vmatpush3.bf16.msra.mxu0 %v3054_v38  ;;  %v341_v39 = vrot.slane %v334_v47, %v3026_v20  ;;  %v288_v24 = vand.u32 8388607, %v282_v52  ;;  %v289_v49 = vand.u32 8388607, %v283_v6  ;;  %v2614_v40 = vld [vmem:[#allocation8 + $0x138] sm:$0xff]  }
  0x88   :  { %2351 = vmatprep.subr.bf16.mxu0 %v3057_v25  ;;  %v399_v31 = vrot.slane %v391_v35, %v3026_v20  ;;  %v406_v63 = vrot.slane %v392_v11, %v3026_v20  ;;  %v2636_v11 = vld [vmem:[#allocation10 + $0x70] ss:$8 sps:$4 sm:$0xff]  }
  0x89   :  { %2372 = vmatpush3.bf16.msra.mxu1 %v2906_v12  ;;  %v345_v0 = vadd.f32 %v341_v39, %v310_v60  ;;  %v294_v46 = vcvt.s32.f32 %v288_v24  ;;  %v295_v58 = vcvt.s32.f32 %v289_v49  ;;  %v2639_v24 = vld [vmem:[#allocation11 + $0x40] sm:$0xff]  }
  0x8a   :  { %2373 = vmatprep.subr.bf16.mxu1 %v2919_v17  ;;  %v407_v59 = vcombine.low %v399_v31, %v406_v63  ;;  %v2640_v49 = vld [vmem:[#allocation11] sm:$0xff]   ;;  %v2643_v31 = vld [vmem:[#allocation11 + $0x50] sm:$0xff]  }
  0x8b   :  { %2352 = vmatpush3.bf16.msra.mxu0 %v3062_v55  ;;  %v371_v12 = vrot.slane %v345_v0, %v3026_v20  ;;  %v300_v62 = vmul.f32 1.1920929e-08, %v294_v46  ;;  %v301_v17 = vmul.f32 1.1920929e-08, %v295_v58  ;;  %v2642_v0 = vld [vmem:[#allocation11 + $0x8] sm:$0xff]   ;;  %v2644_v63 = vld [vmem:[#allocation11 + $0x10] sm:$0xff]  }
  0x8c   :  { %2353 = vmatprep.subr.bf16.mxu0 %v3066_v16  ;;  %v418_v1 = vadd.f32 %v407_v59, %v309_v29  ;;  %v2645_v46 = vld [vmem:[#allocation11 + $0x58] sm:$0xff]   ;;  %v2648_v59 = vld [vmem:[#allocation11 + $0x20] sm:$0xff]  }
  0x8d   :  { %2374 = vmatpush3.bf16.msra.mxu1 %v2923_v19  ;;  %v372_v27 = vcombine.high %v371_v12, %v371_v12  ;;  %v2183_v53 = vadd.f32 -0.05, %v300_v62  ;;  %v2184_v57 = vadd.f32 -0.05, %v301_v17  ;;  %v383_v39 = vpack.c.bf16 %v371_v12, %v371_v12  ;;  %v2646_v58 = vld [vmem:[#allocation11 + $0x18] sm:$0xff]   ;;  %v2647_v12 = vld [vmem:[#allocation11 + $0x60] sm:$0xff]  }
  0x8e   :  { %2375 = vmatprep.subr.bf16.mxu1 %v2945_v26  ;;  %v429_v19 = vrot.slane %v418_v1, %v3026_v20  ;;  %v422_v18 = vcombine.high %v418_v1, %v418_v1  ;;  %v2649_v62 = vld [vmem:[#allocation11 + $0x68] sm:$0xff]  }
  0x8f   :  { %2354 = vmatpush3.bf16.msra.mxu0 %v3072_v45  ;;  %v384_v61 = vpack.c.bf16 %v372_v27, %v372_v27  ;;  %v408_v26 = vcombine.low %v2183_v53, %v2184_v57  ;;  %v2650_v17 = vld [vmem:[#allocation11 + $0x28] sm:$0xff]  }
  0x90   :  { %2355 = vmatprep.subr.bf16.mxu0 %v3075_v50  ;;  %v437_v56 = vcombine.high %v429_v19, %v429_v19  ;;  %v436_v29 = vrot.slane %v422_v18, %v3026_v20 }
  0x91   :  { %2376 = vmatpush3.bf16.msra.mxu1 %v2951_v28  ;;  %956 = vmatprep.mubr.bf16.mxu0 %v384_v61  ;;  %v415_v47 = vrot.slane %v408_v26, %v3026_v20 }
  0x92   :  { %2377 = vmatprep.subr.bf16.mxu1 %v2967_v34  ;;  %v454_v28 = vpack.c.bf16 %v437_v56, %v437_v56  ;;  %v438_v34 = vcombine.high %v436_v29, %v436_v29 }
  0x93   :  { %2356 = vmatpush3.bf16.msra.mxu0 %v3085_v37  ;;  %v419_v54 = vadd.f32 %v415_v47, %v310_v60  ;;  %v2633_v60 = vld [vmem:[#allocation10 + $0x60] ss:$8 sps:$4 sm:$0xff]  }
  0x94   :  { %2357 = vmatprep.subr.bf16.mxu0 %v2611_v5  ;;  %999 = vmatprep.mubr.bf16.mxu1 %v454_v28  ;;  %v456_v35 = vpack.c.bf16 %v438_v34, %v438_v34 }
  0x95   :  { %2378 = vmatpush3.bf16.msra.mxu1 %v2972_v36  ;;  %v445_v52 = vrot.slane %v419_v54, %v3026_v20  ;;  %v453_v36 = vpack.c.bf16 %v429_v19, %v429_v19  ;;  %v2621_v20 = vld [vmem:[#allocation10 + $0x20] ss:$8 sps:$4 sm:$0xff]  }
  0x96   :  { %2379 = vmatprep.subr.bf16.mxu1 %v2983_v42 }
  0x97   :  { %2358 = vmatpush3.bf16.msra.mxu0 %v2612_v43  ;;  %v446_v6 = vcombine.high %v445_v52, %v445_v52 }
  0x98   :  { %2359 = vmatprep.subr.bf16.mxu0 %v2613_v33 }
  0x99   :  { %2380 = vmatpush3.bf16.msra.mxu1 %v2986_v44  ;;  %v458_v42 = vpack.c.bf16 %v446_v6, %v446_v6  ;;  %v2617_v44 = vld [vmem:[#allocation10 + $0x4] ss:$8 sps:$4 sm:$0xff]  }
  0x9a   :  { %2381 = vmatprep.subr.bf16.mxu1 %v2995_v48  ;;  %v2620_v48 = vld [vmem:[#allocation10 + $0x14] ss:$8 sps:$4 sm:$0xff]  }
  0x9b   :  { %2360 = vmatpush3.bf16.msra.mxu0 %v2614_v40 }
  0x9c   :  { %2389 = vmatprep.subr.bf16.mxu0 %v2881_v2  ;;  %v3236_v2 = vld [vmem:[#allocation18_spill] sm:$0xff] }
  0x9d   :  { %2382 = vmatpush3.bf16.msra.mxu1 %v2998_v51  ;;  %v2618_v51 = vld [vmem:[#allocation10 + $0x10] ss:$8 sps:$4 sm:$0xff]  }
  0x9e   :  { %957 = vmatmul.mubr.bf16.vlgmr.msra.gmra.mrb[4].mxu0 %v383_v39  ;;  %2411 = vmatprep.subr.bf16.mxu1 %v3013_v3  ;;  %v2623_v3 = vld [vmem:[#allocation10 + $0x24] ss:$8 sps:$4 sm:$0xff]  }
  0x9f   :  { %2390 = vmatpush3.bf16.msra.mxu0 %v2884_v4  ;;  %1039 = vmatprep.mubr.bf16.mxu0 %v456_v35  ;;  %v3237_v4 = vld [vmem:[#allocation19_spill] sm:$0xff] }
  0xa0   :  { %1000 = vmatmul.mubr.bf16.vlgmr.msra.gmra.mrb[4].mxu1 %v453_v36  ;;  %2391 = vmatprep.subr.bf16.mxu0 %v2893_v7  ;;  %v3238_v7 = vld [vmem:[#allocation20_spill] sm:$0xff] }
  0xa1   :  { %2412 = vmatpush3.bf16.msra.mxu1 %v3042_v41  ;;  %1079 = vmatprep.mubr.bf16.mxu1 %v458_v42  ;;  %v2626_v41 = vld [vmem:[#allocation10 + $0x34] ss:$8 sps:$4 sm:$0xff]  }
  0xa2   :  { %2413 = vmatprep.subr.bf16.mxu1 %v3045_v22  ;;  %v2624_v22 = vld [vmem:[#allocation10 + $0x30] ss:$8 sps:$4 sm:$0xff]  }
  0xa3   :  { %2392 = vmatpush3.bf16.msra.mxu0 %v2898_v9  ;;  %v3239_v9 = vld [vmem:[#allocation21_spill] sm:$0xff] }
  0xa4   :  { %2393 = vmatprep.subr.bf16.mxu0 %v2909_v13  ;;  %v3240_v13 = vld [vmem:[#allocation22_spill] sm:$0xff] }
  0xa5   :  { %2414 = vmatpush3.bf16.msra.mxu1 %v3047_v14  ;;  %v2629_v14 = vld [vmem:[#allocation10 + $0x44] ss:$8 sps:$4 sm:$0xff]  }
  0xa6   :  { %2415 = vmatprep.subr.bf16.mxu1 %v3050_v10  ;;  %v2627_v10 = vld [vmem:[#allocation10 + $0x40] ss:$8 sps:$4 sm:$0xff]  }
  0xa7   :  { %2394 = vmatpush3.bf16.msra.mxu0 %v2915_v15  ;;  %v455_v15 = vpack.c.bf16 %v436_v29, %v436_v29 }
  0xa8   :  { %2395 = vmatprep.subr.bf16.mxu0 %v2927_v21  ;;  %v3241_v21 = vld [vmem:[#allocation23_spill] sm:$0xff] }
  0xa9   :  { %2416 = vmatpush3.bf16.msra.mxu1 %v3054_v38  ;;  %v2630_v38 = vld [vmem:[#allocation10 + $0x50] ss:$8 sps:$4 sm:$0xff]  }
  0xaa   :  { %2417 = vmatprep.subr.bf16.mxu1 %v3057_v25  ;;  %v2632_v25 = vld [vmem:[#allocation10 + $0x54] ss:$8 sps:$4 sm:$0xff]  }
  0xab   :  { %2396 = vmatpush3.bf16.msra.mxu0 %v2934_v23  ;;  %v457_v23 = vpack.c.bf16 %v445_v52, %v445_v52 }
  0xac   :  { %2397 = vmatprep.subr.bf16.mxu0 %v2957_v30  ;;  %v2774_v30 = vmov 0.0  }
  0xad   :  { %2418 = vmatpush3.bf16.msra.mxu1 %v3062_v55  ;;  %87 = vst [vmem:[#allocation2] sm:$0xf] %v2774_v30  ;;  %v2635_v55 = vld [vmem:[#allocation10 + $0x64] ss:$8 sps:$4 sm:$0xff]  }
  0xae   :  { %2419 = vmatprep.subr.bf16.mxu1 %v3066_v16  ;;  %v2775_v16 = vmov 0  }
  0xaf   :  { %2398 = vmatpush3.bf16.msra.mxu0 %v2962_v32  ;;  %v2615_v32 = vld [vmem:[#allocation10] ss:$8 sps:$4 sm:$0xff]  }
  0xb0   :  { %2399 = vmatprep.subr.bf16.mxu0 %v3236_v2 }
  0xb1   :  { %2420 = vmatpush3.bf16.msra.mxu1 %v3072_v45  ;;  %v2638_v45 = vld [vmem:[#allocation10 + $0x74] ss:$8 sps:$4 sm:$0xff]  }
  0xb2   :  { %2421 = vmatprep.subr.bf16.mxu1 %v3075_v50  ;;  %v2641_v50 = vld [vmem:[#allocation11 + $0x48] sm:$0xff]  }
  0xb3   :  { %2400 = vmatpush3.bf16.msra.mxu0 %v3237_v4 }
  0xb4   :  { %2401 = vmatprep.subr.bf16.mxu0 %v3238_v7  ;;  %v555_v54 = vld [vmem:[#allocation2] sm:$0x3] }
  0xb5   :  { %2422 = vmatpush3.bf16.msra.mxu1 %v3085_v37 }
  0xb6   :  { %2423 = vmatprep.subr.bf16.mxu1 %v2611_v5 }
  0xb7   :  { %2402 = vmatpush3.bf16.msra.mxu0 %v3239_v9 }
  0xb8   :  { %2403 = vmatprep.subr.bf16.mxu0 %v3240_v13 }
  0xb9   :  { %2424 = vmatpush3.bf16.msra.mxu1 %v2612_v43 }
  0xba   :  { %2425 = vmatprep.subr.bf16.mxu1 %v2613_v33 }
  0xbb   :  { %2404 = vmatpush3.bf16.msra.mxu0 %v3241_v21 }
  0xbc   :  { %1211 = vmatprep.subr.bf16.mxu0 %v2617_v44 }
  0xbd   :  { %2426 = vmatpush3.bf16.msra.mxu1 %v2614_v40 }
  0xbe   :  { %1040 = vmatmul.mubr.bf16.vlgmr.msra.gmra.mrb[8].mxu0 %v455_v15  ;;  %2433 = vmatprep.subr.bf16.mxu1 %v2639_v24 }
  0xbf   :  { %1212 = vmatpush1.bf16.msra.mxu0 %v2615_v32  ;;  %1243 = vmatprep.mubr.bf16.mxu0 %v2775_v16  ;;  %v966_v32 = vld [vmem:[#allocation2 + $0x2] sm:$0x3]  ;;  %v1119_v16 = vld [vmem:[%s3220_s5] sm:$0x3] }
  0xc0   :  { %1080 = vmatmul.mubr.bf16.vlgmr.msra.gmra.mrb[8].mxu1 %v457_v23  ;;  %1213 = vmatprep.subr.bf16.mxu0 %v2620_v48 }
  0xc1   :  { %2434 = vmatpush3.bf16.msra.mxu1 %v2640_v49 }
  0xc2   :  { %2435 = vmatprep.subr.bf16.mxu1 %v2641_v50 }
  0xc3   :  { %1214 = vmatpush1.bf16.msra.mxu0 %v2618_v51 }
  0xc4   :  { %1215 = vmatprep.subr.bf16.mxu0 %v2623_v3  ;;  %v2233_v3 = vld [vmem:[%s3218_s3] ss:$0 sm:$0xff] }
  0xc5   :  { %2436 = vmatpush3.bf16.msra.mxu1 %v2642_v0 }
  0xc6   :  { %2437 = vmatprep.subr.bf16.mxu1 %v2643_v31 }
  0xc7   :  { %1216 = vmatpush1.bf16.msra.mxu0 %v2621_v20 }
  0xc8   :  { %1217 = vmatprep.subr.bf16.mxu0 %v2626_v41 }
  0xc9   :  { %2438 = vmatpush3.bf16.msra.mxu1 %v2644_v63 }
  0xca   :  { %2439 = vmatprep.subr.bf16.mxu1 %v2645_v46 }
  0xcb   :  { %1218 = vmatpush1.bf16.msra.mxu0 %v2624_v22 }
  0xcc   :  { %1219 = vmatprep.subr.bf16.mxu0 %v2629_v14 }
  0xcd   :  { %2440 = vmatpush3.bf16.msra.mxu1 %v2646_v58 }
  0xce   :  { %2441 = vmatprep.subr.bf16.mxu1 %v2647_v12 }
  0xcf   :  { %1220 = vmatpush1.bf16.msra.mxu0 %v2627_v10  ;;  %v2651_v10 = vld [vmem:[#allocation11 + $0x70] sm:$0xff]  }
  0xd0   :  { %1221 = vmatprep.subr.bf16.mxu0 %v2632_v25  ;;  %v2653_v25 = vld [vmem:[#allocation11 + $0x78] sm:$0xff]  }
  0xd1   :  { %2442 = vmatpush3.bf16.msra.mxu1 %v2648_v59 }
  0xd2   :  { %2443 = vmatprep.subr.bf16.mxu1 %v2649_v62 }
  0xd3   :  { %1222 = vmatpush1.bf16.msra.mxu0 %v2630_v38  ;;  %v2652_v38 = vld [vmem:[#allocation11 + $0x30] sm:$0xff]  }
  0xd4   :  { %1223 = vmatprep.subr.bf16.mxu0 %v2635_v55  ;;  %v2654_v55 = vld [vmem:[#allocation11 + $0x38] sm:$0xff]  }
  0xd5   :  { %2444 = vmatpush3.bf16.msra.mxu1 %v2650_v17 }
  0xd6   :  { %2445 = vmatprep.subr.bf16.mxu1 %v2651_v10 }
  0xd7   :  { %1224 = vmatpush1.bf16.msra.mxu0 %v2633_v60  ;;  %v1123_v60 = vsub.s32 0, %v2895_v8 }
  0xd8   :  { %1225 = vmatprep.subr.bf16.mxu0 %v2638_v45  ;;  %v1127_v45 = vsub.s32 1, %v2895_v8 }
  0xd9   :  { %2446 = vmatpush3.bf16.msra.mxu1 %v2652_v38 }
  0xda   :  { %2447 = vmatprep.subr.bf16.mxu1 %v2653_v25  ;;  %v1128_v24 = vrot.slane %v1119_v16, %v1127_v45 }
  0xdb   :  { %1226 = vmatpush1.bf16.msra.mxu0 %v2636_v11  ;;  %v1124_v11 = vrot.slane %v1119_v16, %v1123_v60 }
  0xdd   :  { %2448 = vmatpush3.bf16.msra.mxu1 %v2654_v55 }
 0x151   :  { %v2317_v27 = vpop.f32.mrb[0].mxu0 }
 0x152   :  { %v2318_v37 = vpop.f32.mrb[1].mxu0 }
 0x153   :  { %v2319_v1 = vadd.f32 %v2318_v37, %v2317_v27  ;;  %v2320_v53 = vpop.f32.mrb[2].mxu0  ;;  %v2339_v57 = vpop.f32.mrb[0].mxu1  ;;  %v2250_v27 = vld [vmem:[%s3222_s7] ss:$0 sm:$0xff] }
 0x154   :  { %v2321_v5 = vpop.f32.mrb[3].mxu0  ;;  %v2340_v61 = vpop.f32.mrb[1].mxu1 }
 0x155   :  { %v2341_v19 = vadd.f32 %v2340_v61, %v2339_v57  ;;  %v2342_v18 = vpop.f32.mrb[2].mxu1 }
 0x156   :  { %v2343_v26 = vpop.f32.mrb[3].mxu1 }
 0x157   :  { %v919_v43 = vadd.f32 %v2341_v19, %v2319_v1 }
 0x171   :  { %v2361_v56 = vpop.f32.mrb[4].mxu0 }
 0x172   :  { %v2362_v29 = vpop.f32.mrb[5].mxu0 }
 0x173   :  { %v2363_v47 = vadd.f32 %v2362_v29, %v2361_v56  ;;  %v2364_v33 = vpop.f32.mrb[6].mxu0  ;;  %v2383_v28 = vpop.f32.mrb[4].mxu1 }
 0x174   :  { %v2365_v40 = vpop.f32.mrb[7].mxu0  ;;  %v2384_v34 = vpop.f32.mrb[5].mxu1 }
 0x175   :  { %v959_v52 = vadd.f32 %v2363_v47, %v919_v43  ;;  %v2385_v6 = vadd.f32 %v2384_v34, %v2383_v28  ;;  %v2386_v39 = vpop.f32.mrb[6].mxu1 }
 0x176   :  { %v2387_v35 = vpop.f32.mrb[7].mxu1 }
 0x177   :  { %v964_v36 = vadd.f32 %v959_v52, %v555_v54 }
 0x179   :  { %965 = vst [vmem:[#allocation2] sm:$0x3] %v964_v36 }
 0x191   :  { %v2405_v42 = vpop.f32.mrb[8].mxu0 }
 0x192   :  { %v2406_v2 = vpop.f32.mrb[9].mxu0 }
 0x193   :  { %v2407_v4 = vadd.f32 %v2406_v2, %v2405_v42  ;;  %v2408_v7 = vpop.f32.mrb[10].mxu0  ;;  %v2427_v9 = vpop.f32.mrb[8].mxu1 }
 0x194   :  { %v2409_v13 = vpop.f32.mrb[11].mxu0  ;;  %v2428_v15 = vpop.f32.mrb[9].mxu1 }
 0x195   :  { %v1042_v21 = vadd.f32 %v2407_v4, %v2385_v6  ;;  %v2429_v23 = vadd.f32 %v2428_v15, %v2427_v9  ;;  %v2430_v30 = vpop.f32.mrb[10].mxu1 }
 0x196   :  { %v2431_v44 = vpop.f32.mrb[11].mxu1 }
 0x197   :  { %v1082_v48 = vadd.f32 %v2429_v23, %v1042_v21 }
 0x199   :  { %v1087_v51 = vadd.f32 %v1082_v48, %v966_v32 }
 0x19b   :  { %1088 = vst [vmem:[#allocation2 + $0x2] sm:$0x3] %v1087_v51 }
 0x1a2   :  { %v1092_v20 = vld [vmem:[#allocation2] sm:$0xf] }
 0x1a3   :  { %v1100_v41 = vadd.f32 %v2233_v3, %v1092_v20 }
 0x1a5   :  { %v1101_v22 = vmax.f32 %v1100_v41, 0.0 }
 0x1a7   :  { %v1102_v14 = vpack.c.bf16 %v1101_v22, %v1101_v22 }
 0x1a9   :  { %1244 = vmatmul.mubr.bf16.vlgmr.msra.gmra.mrb[12].mxu0 %v1102_v14 }
 0x27c   :  { %v1245_v49 = vpop.f32.mrb[12].mxu0 }
 0x27d   :  { %v1246_v50 = vadd.f32 %v1245_v49, %v1124_v11  ;;  %v1247_v0 = vpop.f32.mrb[13].mxu0 }
 0x27e   :  { %v1248_v31 = vadd.f32 %v1247_v0, %v1128_v24  ;;  %v1249_v63 = vpop.f32.mrb[14].mxu0 }
 0x27f   :  { %v1252_v46 = vmax.f32 %v1246_v50, 0.0  ;;  %v1250_v58 = vpop.f32.mrb[15].mxu0 }
 0x280   :  { %v1253_v12 = vmax.f32 %v1248_v31, 0.0 }
 0x281   :  { %v1254_v62 = vpack.c.bf16 %v1252_v46, %v1252_v46 }
 0x282   :  { %v1255_v59 = vpack.c.bf16 %v1253_v12, %v1253_v12 }
 0x284   :  { %1423 = vmatprep.mubr.bf16.mxu1 %v1255_v59 }
 0x285   :  { %1424 = vmatmul.mubr.bf16.vlgmr.msra.gmra.mrb[12].mxu1 %v1254_v62 }
 0x358   :  { %v2449_v17 = vpop.f32.mrb[12].mxu1 }
 0x359   :  { %v2450_v8 = vpop.f32.mrb[13].mxu1 }
 0x35a   :  { %v2451_v37 = vadd.f32 %v2450_v8, %v2449_v17  ;;  %v2452_v1 = vpop.f32.mrb[14].mxu1 }
 0x35b   :  { %v2453_v53 = vpop.f32.mrb[15].mxu1 }
 0x35c   :  { %v1426_v57 = vadd.f32 %v2451_v37, %v2250_v27 }
 0x35e   :  { %v1432_v5 = vrot.slane %v1426_v57, 2  ;;  %v1450_v61 = vsel %vm1436_vm0, %v1426_v57, 0.0 }
 0x35f   :  { %v1451_v19 = vrot.slane %v1450_v61, 4 }
 0x360   :  { %v1434_v18 = vsub.f32 %v1426_v57, %v1432_v5  ;;  %v1460_v26 = vsel %vm1436_vm0, %v1432_v5, 0.0 }
 0x361   :  { %v1461_v43 = vrot.slane %v1460_v26, 4  ;;  %v1452_v56 = vadd.f32 %v1451_v19, %v1450_v61 }
 0x362   :  { %v1435_v29 = vmul.f32 %v1434_v18, %v1434_v18 }
 0x363   :  { %v1462_v47 = vadd.f32 %v1461_v43, %v1460_v26  ;;  %v1453_v33 = vrot.slane %v1452_v56, 2 }
 0x364   :  { %v1437_v28 = vsel %vm1436_vm0, %v1435_v29, 0.0 }
 0x365   :  { %v1463_v54 = vrot.slane %v1462_v47, 2  ;;  %1438 = vadd.xlane.f32.xlu1 %v1437_v28  ;;  %v1454_v40 = vadd.f32 %v1453_v33, %v1452_v56 }
 0x367   :  { %v1464_v34 = vadd.f32 %v1463_v54, %v1462_v47  ;;  %v1455_v52 = vrot.slane %v1454_v40, 1 }
 0x369   :  { %v1465_v6 = vrot.slane %v1464_v34, 1  ;;  %v1456_v39 = vadd.f32 %v1455_v52, %v1454_v40 }
 0x36b   :  { %v1466_v35 = vadd.f32 %v1465_v6, %v1464_v34  ;;  %v1458_v36 = vmul.f32 0.5, %v1456_v39 }
 0x36d   :  { %v1459_v42 = vsub.f32 %v1426_v57, %v1458_v36  ;;  %v1467_v2 = vmul.f32 0.5, %v1466_v35 }
 0x36f   :  { %1542 = vxpose.xlu0.b32.start.end [1/1] (short) %v1459_v42, 128  ;;  %2489 = vmatprep.subr.msk.mxu0 %vm1436_vm0, %v1459_v42  ;;  %v1468_v4 = vsub.f32 %v1426_v57, %v1467_v2  ;;  %v1469_v7 = vmul.f32 %v1459_v42, %v1459_v42 }
 0x370   :  { %2490 = vmatpush3.msk.msra.mxu0 %vm1436_vm0, %v1459_v42 }
 0x371   :  { %v1477_v9 = vmul.f32 %v1468_v4, %v1468_v4  ;;  %v1772_v13 = vrot.slane %v1468_v4, 2  ;;  %v1470_v15 = vsel %vm1436_vm0, %v1469_v7, 0.0 }
 0x372   :  { %v1471_v21 = vrot.slane %v1470_v15, 4 }
 0x373   :  { %v1479_v23 = vrot.slane %v1477_v9, 2  ;;  %2515 = vmatprep.subr.msk.mxu1 %vm1436_vm0, %v1772_v13 }
 0x374   :  { %2516 = vmatpush3.msk.msra.mxu1 %vm1436_vm0, %v1772_v13  ;;  %v1472_v30 = vadd.f32 %v1471_v21, %v1470_v15 }
 0x375   :  { %v1481_v32 = vsel %vm1436_vm0, %v1479_v23, 0.0 }
 0x376   :  { %v1482_v44 = vrot.slane %v1481_v32, 4  ;;  %v1473_v48 = vrot.slane %v1472_v30, 2 }
 0x378   :  { %v1483_v51 = vadd.f32 %v1482_v44, %v1481_v32  ;;  %v1474_v3 = vadd.f32 %v1473_v48, %v1472_v30 }
 0x37a   :  { %v1484_v20 = vrot.slane %v1483_v51, 2  ;;  %v1475_v41 = vrot.slane %v1474_v3, 1 }
 0x37c   :  { %v1485_v22 = vadd.f32 %v1484_v20, %v1483_v51  ;;  %v1476_v14 = vadd.f32 %v1475_v41, %v1474_v3 }
 0x37e   :  { %v1486_v10 = vrot.slane %v1485_v22, 1  ;;  %v1488_v38 = vadd.f32 0.0001, %v1476_v14  ;;  %v2041_v25 = vmul.f32 %v1476_v14, %v1476_v14 }
 0x380   :  { %v1487_v55 = vadd.f32 %v1486_v10, %v1485_v22  ;;  %v2042_v60 = vsel %vm1506_vm1, %v2041_v25, 0.0  ;;  %2655 = vrsqrt.f32 %v1488_v38  ;;  %vm1491_vm2 = vcmp.eq.f32.partialorder %v1488_v38, inf }
 0x381   :  { %2043 = vadd.xlane.f32.xlu1 %v2042_v60  ;;  %v1494_v50 = vand.u32 2147483648, %v1488_v38  ;;  %vm1493_vm3 = vcmp.eq.f32.partialorder %v1488_v38, 0.0 }
 0x382   :  { %v1496_v16 = vadd.f32 0.0001, %v1487_v55  ;;  %v2093_v45 = vmul.f32 %v1487_v55, %v1487_v55 }
 0x384   :  { %2657 = vrsqrt.f32 %v1496_v16  ;;  %v3152_v11 = vsel %vm1506_vm1, %v2093_v45, 0.0  ;;  %vm1499_vm4 = vcmp.eq.f32.partialorder %v1496_v16, inf  ;;  %v1502_v12 = vand.u32 2147483648, %v1496_v16 }
 0x385   :  { %vm1501_vm5 = vcmp.eq.f32.partialorder %v1496_v16, 0.0 }
 0x38a   :  { %v2656_v24 = vpop.eup %2655 }
 0x38b   :  { %v1490_v49 = vmul.f32 %v2656_v24, %v1488_v38 }
 0x38d   :  { %v1492_v0 = vsel %vm1491_vm2, %v1488_v38, %v1490_v49 }
 0x38e   :  { %v2658_v31 = vpop.eup %2657  ;;  %v1495_v63 = vsel %vm1493_vm3, %v1494_v50, %v1492_v0 }
 0x38f   :  { %v1504_v46 = vsub.f32 1.0, %v1495_v63  ;;  %v1498_v58 = vmul.f32 %v2658_v31, %v1496_v16 }
 0x391   :  { %v1505_v59 = vmax.f32 %v1504_v46, 0.0  ;;  %v1500_v62 = vsel %vm1499_vm4, %v1496_v16, %v1498_v58 }
 0x392   :  { %v1503_v17 = vsel %vm1501_vm5, %v1502_v12, %v1500_v62 }
 0x393   :  { %v1507_v27 = vsel %vm1506_vm1, %v1505_v59, 0.0  ;;  %v1523_v8 = vsub.f32 1.0, %v1503_v17 }
 0x394   :  { %1508 = vadd.xlane.f32.xlu1 %v1507_v27 }
 0x395   :  { %v1524_v37 = vmax.f32 %v1523_v8, 0.0 }
 0x397   :  { %v1525_v1 = vsel %vm1506_vm1, %v1524_v37, 0.0 }
 0x398   :  { %1526 = vadd.xlane.f32.xlu1 %v1525_v1 }
 0x3ac   :  { %1774 = vxpose.xlu0.b32.start.end [1/1] (short) %v1772_v13, 128 }
 0x3ef   :  { %v1558_v53 = vpop.trf.xlu0 }
 0x3f0   :  { %2491 = vmatprep.mubr.msk.f32.mxu0 %vm1574_vm6, %v1558_v53 }
 0x3f2   :  { %v1439_v57 = vpop.xlane.xlu1 %1438 }
 0x3f3   :  { %v1440_v5 = vrot.slane %v1439_v57, 4  ;;  %v1559_v61 = vpop.trf.xlu0 }
 0x3f4   :  { %2492 = vmatmul.mubr.msk.f32.vlgmr.msra.gmra.mrb[16].mxu0 %vm1574_vm6, %v1559_v61 }
 0x3f5   :  { %v1441_v19 = vadd.f32 %v1440_v5, %v1439_v57 }
 0x3f7   :  { %v1442_v18 = vrot.slane %v1441_v19, 2  ;;  %v1560_v26 = vpop.trf.xlu0 }
 0x3f8   :  { %2494 = vmatprep.mubr.msk.f32.mxu0 %vm1574_vm6, %v1560_v26 }
 0x3f9   :  { %v1443_v43 = vadd.f32 %v1442_v18, %v1441_v19 }
 0x3fb   :  { %v1561_v56 = vpop.trf.xlu0  ;;  %v1444_v29 = vrot.slane %v1443_v43, 1 }
 0x3fc   :  { %2495 = vmatmul.mubr.msk.f32.gmra.mrb[18].mxu0 %vm1574_vm6, %v1561_v56 }
 0x3fd   :  { %v1445_v47 = vadd.f32 %v1444_v29, %v1443_v43 }
 0x3ff   :  { %v1562_v33 = vpop.trf.xlu0  ;;  %2541 = vpush %v1445_v47 }
 0x400   :  { %2497 = vmatprep.mubr.msk.f32.mxu0 %vm1574_vm6, %v1562_v33 }
 0x403   :  { %v1563_v28 = vpop.trf.xlu0 }
 0x404   :  { %2498 = vmatmul.mubr.msk.f32.gmra.mrb[20].mxu0 %vm1574_vm6, %v1563_v28 }
 0x407   :  { %v1564_v54 = vpop.trf.xlu0 }
 0x408   :  { %2500 = vmatprep.mubr.msk.f32.mxu0 %vm1574_vm6, %v1564_v54 }
 0x40b   :  { %v1565_v40 = vpop.trf.xlu0 }
 0x40c   :  { %2501 = vmatmul.mubr.msk.f32.gmra.mrb[22].mxu0 %vm1574_vm6, %v1565_v40 }
 0x40e   :  { %v3168_v35 = vpop.xlane.xlu1 %2043 }
 0x40f   :  { %v1566_v34 = vpop.trf.xlu0 }
 0x410   :  { %2503 = vmatprep.mubr.msk.f32.mxu0 %vm1574_vm6, %v1566_v34 }
 0x413   :  { %v1567_v52 = vpop.trf.xlu0 }
 0x414   :  { %2504 = vmatmul.mubr.msk.f32.gmra.mrb[24].mxu0 %vm1574_vm6, %v1567_v52 }
 0x417   :  { %v1568_v6 = vpop.trf.xlu0 }
 0x418   :  { %2506 = vmatprep.mubr.msk.f32.mxu0 %vm1574_vm6, %v1568_v6 }
 0x41b   :  { %v1569_v39 = vpop.trf.xlu0 }
 0x41c   :  { %2507 = vmatmul.mubr.msk.f32.gmra.mrb[26].mxu0 %vm1574_vm6, %v1569_v39 }
 0x41f   :  { %v1570_v36 = vpop.trf.xlu0 }
 0x420   :  { %2509 = vmatprep.mubr.msk.f32.mxu0 %vm1574_vm6, %v1570_v36 }
 0x421   :  { %v1509_v42 = vpop.xlane.xlu1 %1508 }
 0x422   :  { %v1510_v2 = vrot.slane %v1509_v42, 4 }
 0x423   :  { %v1571_v4 = vpop.trf.xlu0 }
 0x424   :  { %v1511_v7 = vadd.f32 %v1510_v2, %v1509_v42  ;;  %2510 = vmatmul.mubr.msk.f32.gmra.mrb[28].mxu0 %vm1574_vm6, %v1571_v4 }
 0x425   :  { %v1527_v9 = vpop.xlane.xlu1 %1526 }
 0x426   :  { %v1512_v13 = vrot.slane %v1511_v7, 2  ;;  %v1528_v15 = vrot.slane %v1527_v9, 4 }
 0x427   :  { %v1572_v21 = vpop.trf.xlu0 }
 0x428   :  { %v1529_v23 = vadd.f32 %v1528_v15, %v1527_v9  ;;  %2512 = vmatprep.mubr.msk.f32.mxu0 %vm1574_vm6, %v1572_v21  ;;  %v1513_v30 = vadd.f32 %v1512_v13, %v1511_v7 }
 0x42a   :  { %v1530_v32 = vrot.slane %v1529_v23, 2  ;;  %v1514_v44 = vrot.slane %v1513_v30, 1 }
 0x42b   :  { %v1573_v48 = vpop.trf.xlu0 }
 0x42c   :  { %2513 = vmatmul.mubr.msk.f32.gmra.mrb[30].mxu0 %vm1574_vm6, %v1573_v48  ;;  %v1515_v51 = vadd.f32 %v1514_v44, %v1513_v30  ;;  %v1531_v3 = vadd.f32 %v1530_v32, %v1529_v23 }
 0x42e   :  { %2543 = vpush %v1515_v51  ;;  %v1532_v20 = vrot.slane %v1531_v3, 1 }
 0x42f   :  { %v1790_v41 = vpop.trf.xlu0 }
 0x430   :  { %s3174_s5 = spop %2541  ;;  %2517 = vmatprep.mubr.msk.f32.mxu1 %vm1574_vm6, %v1790_v41  ;;  %v1533_v22 = vadd.f32 %v1532_v20, %v1531_v3 }
 0x431   :  { %s1449_s7 = smul.f32 0.00390625, %s3174_s5 }
 0x432   :  { %2545 = vpush %v1533_v22 }
 0x433   :  { %2116 = sst [smem:[#allocation13 + $0x1]] %s1449_s7  ;;  %v1791_v14 = vpop.trf.xlu0  ;;  %s2109_s26 = smul.f32 25.0, %s1449_s7 }
 0x434   :  { %2518 = vmatmul.mubr.msk.f32.vlgmr.msra.gmra.mrb[16].mxu1 %vm1574_vm6, %v1791_v14 }
 0x437   :  { %v1792_v10 = vpop.trf.xlu0 }
 0x438   :  { %2520 = vmatprep.mubr.msk.f32.mxu1 %vm1574_vm6, %v1792_v10 }
 0x43b   :  { %v1793_v38 = vpop.trf.xlu0 }
 0x43c   :  { %2521 = vmatmul.mubr.msk.f32.gmra.mrb[18].mxu1 %vm1574_vm6, %v1793_v38 }
 0x43f   :  { %v1794_v25 = vpop.trf.xlu0 }
 0x440   :  { %2523 = vmatprep.mubr.msk.f32.mxu1 %vm1574_vm6, %v1794_v25 }
 0x443   :  { %v1795_v55 = vpop.trf.xlu0 }
 0x444   :  { %2524 = vmatmul.mubr.msk.f32.gmra.mrb[20].mxu1 %vm1574_vm6, %v1795_v55 }
 0x447   :  { %v1796_v60 = vpop.trf.xlu0 }
 0x448   :  { %2526 = vmatprep.mubr.msk.f32.mxu1 %vm1574_vm6, %v1796_v60 }
 0x44b   :  { %v1797_v16 = vpop.trf.xlu0 }
 0x44c   :  { %2527 = vmatmul.mubr.msk.f32.gmra.mrb[22].mxu1 %vm1574_vm6, %v1797_v16 }
 0x44f   :  { %v1798_v45 = vpop.trf.xlu0 }
 0x450   :  { %2529 = vmatprep.mubr.msk.f32.mxu1 %vm1574_vm6, %v1798_v45 }
 0x453   :  { %v1799_v24 = vpop.trf.xlu0 }
 0x454   :  { %2530 = vmatmul.mubr.msk.f32.gmra.mrb[24].mxu1 %vm1574_vm6, %v1799_v24 }
 0x457   :  { %v1800_v49 = vpop.trf.xlu0 }
 0x458   :  { %2532 = vmatprep.mubr.msk.f32.mxu1 %vm1574_vm6, %v1800_v49 }
 0x45b   :  { %v1801_v50 = vpop.trf.xlu0 }
 0x45c   :  { %2533 = vmatmul.mubr.msk.f32.gmra.mrb[26].mxu1 %vm1574_vm6, %v1801_v50 }
 0x45f   :  { %v1802_v0 = vpop.trf.xlu0  ;;  %s2544_s19 = spop %2543 }
 0x460   :  { %2535 = vmatprep.mubr.msk.f32.mxu1 %vm1574_vm6, %v1802_v0  ;;  %s1519_s1 = smul.f32 0.0078125, %s2544_s19 }
 0x462   :  { %s1522_s23 = smul.f32 0.5, %s1519_s1 }
 0x463   :  { %v1803_v31 = vpop.trf.xlu0  ;;  %s2546_s20 = spop %2545 }
 0x464   :  { %s1537_s21 = smul.f32 0.0078125, %s2546_s20  ;;  %2536 = vmatmul.mubr.msk.f32.gmra.mrb[28].mxu1 %vm1574_vm6, %v1803_v31 }
 0x466   :  { %s1540_s24 = smul.f32 0.5, %s1537_s21 }
 0x467   :  { %v1804_v63 = vpop.trf.xlu0 }
 0x468   :  { %s1541_s25 = sadd.f32 %s1540_s24, %s1522_s23  ;;  %2538 = vmatprep.mubr.msk.f32.mxu1 %vm1574_vm6, %v1804_v63 }
 0x46a   :  { %s2110_s27 = smul.f32 25.0, %s1541_s25  ;;  %2118 = sst [smem:[#allocation13 + $0x2]] %s1541_s25 }
 0x46b   :  { %v1805_v46 = vpop.trf.xlu0 }
 0x46c   :  { %2539 = vmatmul.mubr.msk.f32.gmra.mrb[30].mxu1 %vm1574_vm6, %v1805_v46  ;;  %s3197_s29 = sadd.f32 %s2110_s27, %s2109_s26 }
 0x4c7   :  { %v2493_v58 = vpop.f32.mrb[16].mxu0 }
 0x4c8   :  { %v2002_v12 = vmul.f32 %v2493_v58, %v2493_v58  ;;  %v1692_v59 = vpop.f32.mrb[17].mxu0 }
 0x4c9   :  { %v2001_v62 = vmul.f32 %v1692_v59, %v1692_v59 }
 0x4cb   :  { %v2017_v17 = vadd.f32 %v2002_v12, %v2001_v62 }
 0x4cf   :  { %v2496_v27 = vpop.f32.mrb[18].mxu0 }
 0x4d0   :  { %v1702_v8 = vpop.f32.mrb[19].mxu0  ;;  %v2004_v1 = vmul.f32 %v2496_v27, %v2496_v27 }
 0x4d1   :  { %v2003_v37 = vmul.f32 %v1702_v8, %v1702_v8 }
 0x4d3   :  { %v2018_v53 = vadd.f32 %v2017_v17, %v2003_v37 }
 0x4d5   :  { %v2019_v57 = vadd.f32 %v2018_v53, %v2004_v1 }
 0x4d7   :  { %v2499_v5 = vpop.f32.mrb[20].mxu0 }
 0x4d8   :  { %v1712_v61 = vpop.f32.mrb[21].mxu0  ;;  %v2006_v18 = vmul.f32 %v2499_v5, %v2499_v5 }
 0x4d9   :  { %v2005_v19 = vmul.f32 %v1712_v61, %v1712_v61 }
 0x4db   :  { %v2020_v26 = vadd.f32 %v2019_v57, %v2005_v19 }
 0x4dd   :  { %v2021_v43 = vadd.f32 %v2020_v26, %v2006_v18 }
 0x4df   :  { %v2502_v56 = vpop.f32.mrb[22].mxu0 }
 0x4e0   :  { %v1722_v29 = vpop.f32.mrb[23].mxu0  ;;  %v2008_v33 = vmul.f32 %v2502_v56, %v2502_v56 }
 0x4e1   :  { %v2007_v47 = vmul.f32 %v1722_v29, %v1722_v29 }
 0x4e3   :  { %v2022_v28 = vadd.f32 %v2021_v43, %v2007_v47 }
 0x4e5   :  { %v2023_v54 = vadd.f32 %v2022_v28, %v2008_v33 }
 0x4e7   :  { %v2505_v40 = vpop.f32.mrb[24].mxu0 }
 0x4e8   :  { %v1732_v34 = vpop.f32.mrb[25].mxu0  ;;  %v2010_v6 = vmul.f32 %v2505_v40, %v2505_v40 }
 0x4e9   :  { %v2009_v52 = vmul.f32 %v1732_v34, %v1732_v34 }
 0x4eb   :  { %v2024_v39 = vadd.f32 %v2023_v54, %v2009_v52 }
 0x4ed   :  { %v2025_v36 = vadd.f32 %v2024_v39, %v2010_v6 }
 0x4ef   :  { %v2508_v42 = vpop.f32.mrb[26].mxu0 }
 0x4f0   :  { %v1742_v2 = vpop.f32.mrb[27].mxu0  ;;  %v2012_v7 = vmul.f32 %v2508_v42, %v2508_v42 }
 0x4f1   :  { %v2011_v4 = vmul.f32 %v1742_v2, %v1742_v2 }
 0x4f3   :  { %v2026_v9 = vadd.f32 %v2025_v36, %v2011_v4 }
 0x4f5   :  { %v2027_v13 = vadd.f32 %v2026_v9, %v2012_v7  ;;  %v2045_v7 = vrot.slane %v3168_v35, 4 }
 0x4f7   :  { %v2511_v15 = vpop.f32.mrb[28].mxu0  ;;  %v2046_v9 = vadd.f32 %v2045_v7, %v3168_v35 }
 0x4f8   :  { %v1752_v21 = vpop.f32.mrb[29].mxu0  ;;  %v2014_v30 = vmul.f32 %v2511_v15, %v2511_v15 }
 0x4f9   :  { %v2013_v23 = vmul.f32 %v1752_v21, %v1752_v21 }
 0x4fb   :  { %v2028_v32 = vadd.f32 %v2027_v13, %v2013_v23  ;;  %v2047_v13 = vrot.slane %v2046_v9, 2 }
 0x4fd   :  { %v2029_v44 = vadd.f32 %v2028_v32, %v2014_v30  ;;  %v2048_v30 = vadd.f32 %v2047_v13, %v2046_v9 }
 0x4ff   :  { %v2514_v48 = vpop.f32.mrb[30].mxu0 }
 0x500   :  { %v1762_v51 = vpop.f32.mrb[31].mxu0  ;;  %v2016_v20 = vmul.f32 %v2514_v48, %v2514_v48  ;;  %v2049_v48 = vrot.slane %v2048_v30, 1 }
 0x501   :  { %v2015_v3 = vmul.f32 %v1762_v51, %v1762_v51 }
 0x503   :  { %v2030_v41 = vadd.f32 %v2029_v44, %v2015_v3 }
 0x505   :  { %v2031_v22 = vadd.f32 %v2030_v41, %v2016_v20  ;;  %v2050_v20 = vadd.f32 %v2049_v48, %v2048_v30 }
 0x507   :  { %v2519_v14 = vpop.f32.mrb[16].mxu1  ;;  %2032 = vadd.xlane.f32.xlu1 %v2031_v22 }
 0x508   :  { %v2054_v10 = vmul.f32 %v2519_v14, %v2519_v14  ;;  %v1922_v38 = vpop.f32.mrb[17].mxu1 }
 0x509   :  { %v2053_v25 = vmul.f32 %v1922_v38, %v1922_v38 }
 0x50b   :  { %v2069_v55 = vadd.f32 %v2054_v10, %v2053_v25 }
 0x50f   :  { %v2522_v60 = vpop.f32.mrb[18].mxu1 }
 0x510   :  { %v1932_v16 = vpop.f32.mrb[19].mxu1  ;;  %v2056_v24 = vmul.f32 %v2522_v60, %v2522_v60 }
 0x511   :  { %v2055_v45 = vmul.f32 %v1932_v16, %v1932_v16 }
 0x513   :  { %v2070_v49 = vadd.f32 %v2069_v55, %v2055_v45 }
 0x515   :  { %v2071_v50 = vadd.f32 %v2070_v49, %v2056_v24 }
 0x517   :  { %v2525_v0 = vpop.f32.mrb[20].mxu1 }
 0x518   :  { %v1942_v31 = vpop.f32.mrb[21].mxu1  ;;  %v2058_v46 = vmul.f32 %v2525_v0, %v2525_v0 }
 0x519   :  { %v2057_v63 = vmul.f32 %v1942_v31, %v1942_v31 }
 0x51b   :  { %v2072_v58 = vadd.f32 %v2071_v50, %v2057_v63 }
 0x51d   :  { %v2073_v12 = vadd.f32 %v2072_v58, %v2058_v46 }
 0x51f   :  { %v2528_v59 = vpop.f32.mrb[22].mxu1 }
 0x520   :  { %v1952_v62 = vpop.f32.mrb[23].mxu1  ;;  %v2060_v27 = vmul.f32 %v2528_v59, %v2528_v59 }
 0x521   :  { %v2059_v17 = vmul.f32 %v1952_v62, %v1952_v62 }
 0x523   :  { %v2074_v8 = vadd.f32 %v2073_v12, %v2059_v17 }
 0x525   :  { %v2075_v37 = vadd.f32 %v2074_v8, %v2060_v27 }
 0x527   :  { %v2531_v1 = vpop.f32.mrb[24].mxu1 }
 0x528   :  { %v1962_v53 = vpop.f32.mrb[25].mxu1  ;;  %v2062_v5 = vmul.f32 %v2531_v1, %v2531_v1 }
 0x529   :  { %v2061_v57 = vmul.f32 %v1962_v53, %v1962_v53 }
 0x52b   :  { %v2076_v61 = vadd.f32 %v2075_v37, %v2061_v57 }
 0x52d   :  { %v2077_v19 = vadd.f32 %v2076_v61, %v2062_v5 }
 0x52f   :  { %v2534_v18 = vpop.f32.mrb[26].mxu1 }
 0x530   :  { %v1972_v26 = vpop.f32.mrb[27].mxu1  ;;  %v2064_v56 = vmul.f32 %v2534_v18, %v2534_v18 }
 0x531   :  { %v2063_v43 = vmul.f32 %v1972_v26, %v1972_v26 }
 0x533   :  { %v2078_v29 = vadd.f32 %v2077_v19, %v2063_v43 }
 0x535   :  { %v2079_v47 = vadd.f32 %v2078_v29, %v2064_v56 }
 0x537   :  { %v2537_v33 = vpop.f32.mrb[28].mxu1 }
 0x538   :  { %v1982_v28 = vpop.f32.mrb[29].mxu1  ;;  %v2066_v40 = vmul.f32 %v2537_v33, %v2537_v33 }
 0x539   :  { %v2065_v54 = vmul.f32 %v1982_v28, %v1982_v28 }
 0x53b   :  { %v2080_v34 = vadd.f32 %v2079_v47, %v2065_v54 }
 0x53d   :  { %v2081_v52 = vadd.f32 %v2080_v34, %v2066_v40 }
 0x53f   :  { %v2540_v6 = vpop.f32.mrb[30].mxu1 }
 0x540   :  { %v1992_v39 = vpop.f32.mrb[31].mxu1  ;;  %v2068_v42 = vmul.f32 %v2540_v6, %v2540_v6 }
 0x541   :  { %v2067_v36 = vmul.f32 %v1992_v39, %v1992_v39 }
 0x543   :  { %v2082_v2 = vadd.f32 %v2081_v52, %v2067_v36 }
 0x545   :  { %v2083_v4 = vadd.f32 %v2082_v2, %v2068_v42 }
 0x547   :  { %2084 = vadd.xlane.f32.xlu1 %v2083_v4 }
 0x54b   :  { %2095 = vadd.xlane.f32.xlu1 %v3152_v11 }
 0x594   :  { %v2033_v15 = vpop.xlane.xlu1 %2032 }
 0x595   :  { %v2034_v21 = vrot.slane %v2033_v15, 4 }
 0x597   :  { %v2035_v23 = vadd.f32 %v2034_v21, %v2033_v15 }
 0x599   :  { %v2036_v32 = vrot.slane %v2035_v23, 2 }
 0x59b   :  { %v2037_v44 = vadd.f32 %v2036_v32, %v2035_v23 }
 0x59d   :  { %v2038_v51 = vrot.slane %v2037_v44, 1 }
 0x59f   :  { %v2039_v3 = vadd.f32 %v2038_v51, %v2037_v44 }
 0x5a1   :  { %2547 = vpush %v2039_v3 }
 0x5a2   :  { %2549 = vpush %v2050_v20 }
 0x5d2   :  { %s2548_s30 = spop %2547 }
 0x5d3   :  { %s2550_s2 = spop %2549 }
 0x5d4   :  { %v2085_v41 = vpop.xlane.xlu1 %2084  ;;  %s2052_s9 = ssub.f32 %s2548_s30, %s2550_s2 }
 0x5d5   :  { %v2086_v22 = vrot.slane %v2085_v41, 4 }
 0x5d7   :  { %v2087_v11 = vadd.f32 %v2086_v22, %v2085_v41 }
 0x5d8   :  { %v2096_v14 = vpop.xlane.xlu1 %2095 }
 0x5d9   :  { %v2088_v10 = vrot.slane %v2087_v11, 2  ;;  %v2097_v38 = vrot.slane %v2096_v14, 4 }
 0x5db   :  { %v2098_v35 = vadd.f32 %v2097_v38, %v2096_v14  ;;  %v2089_v25 = vadd.f32 %v2088_v10, %v2087_v11 }
 0x5dd   :  { %v2099_v55 = vrot.slane %v2098_v35, 2  ;;  %v2090_v60 = vrot.slane %v2089_v25, 1 }
 0x5df   :  { %v2100_v16 = vadd.f32 %v2099_v55, %v2098_v35  ;;  %v2091_v45 = vadd.f32 %v2090_v60, %v2089_v25 }
 0x5e1   :  { %2551 = vpush %v2091_v45  ;;  %v2101_v24 = vrot.slane %v2100_v16, 1 }
 0x5e3   :  { %v2102_v49 = vadd.f32 %v2101_v24, %v2100_v16 }
 0x5e5   :  { %2553 = vpush %v2102_v49 }
 0x612   :  { %s2552_s28 = spop %2551 }
 0x616   :  { %s2554_s10 = spop %2553 }
 0x617   :  { %s2104_s4 = ssub.f32 %s2552_s28, %s2554_s10 }
 0x619   :  { %s2105_s22 = sadd.f32 %s2104_s4, %s2052_s9 }
 0x61b   :  { %s2108_s6 = smul.f32 0.0078125, %s2105_s22 }
 0x61d   :  { %s2112_s15 = sadd.f32 %s3197_s29, %s2108_s6 }
 0x61e   :  { %2120 = sst [smem:[#allocation13 + $0x3]] %s2108_s6 }
 0x61f   :  { %2114 = sst [smem:[#allocation13]] %s2112_s15 }
 0x620   :  { %2756 = shalt.err (!%p2753_p6)
}
 0x621   :  { %s2776_s3 = smov [#allocation13]  }
 0x622   :  { %2128 = dma.smem_to_hbm %s2776_s3, 16, %s3223_s8, [#allocation7]  }
 0x623   :  { %2763 = dma.done.wait [#allocation7], 16  }
 0x624   :  { %2764 = vsyncadd [#allocation7], 4294967280 }
 0x625   :  { %2132 = sfence }
 0x626   :  { %2133 = vsyncpa [#allocation6], 1 }
 0x627   :  { %2134 = vsyncpa [#allocation9], 1 }
 0x628   :  { %2135 = vsyncpa [#allocation12], 1 }
 0x629   :  { %2136 = vsyncpa [#allocation7], 1 }

</bundles_post_ra>
